<compile_context>
chip_gen: v7x
topology: tpu7x:2x2x1
jax: 0.10.0
libtpu: 0.0.40
codegen_flags: <defaults>
</compile_context>

<pallas_src>
import jax
import jax.numpy as jnp
from jax.experimental import pallas as pl
from jax.experimental.pallas import tpu as pltpu


def _round_up(n, m):
    return (n + m - 1) // m * m


# ---------------------------------------------------------------------------
# Pallas kernel: fused 4-layer MLP (fc1..fc4) with ReLU between layers.
# x and weights are bf16 (VMEM-resident weights across the batch grid);
# matmuls accumulate in f32; bias-add + ReLU are f32; inter-layer activations
# are immediately downcast to bf16.
# ---------------------------------------------------------------------------
def mlp_kernel(x_ref, w1_ref, w2_ref, w3_ref, w4_ref,
               b1_ref, b2_ref, b3_ref, b4_ref, o_ref):
    x = x_ref[...]                                                  # bf16 (TB, D0)

    h = jnp.dot(x, w1_ref[...], preferred_element_type=jnp.float32)
    h = jnp.maximum(h + b1_ref[...], 0.0).astype(jnp.bfloat16)      # only bf16 stays live

    h = jnp.dot(h, w2_ref[...], preferred_element_type=jnp.float32)
    h = jnp.maximum(h + b2_ref[...], 0.0).astype(jnp.bfloat16)

    h = jnp.dot(h, w3_ref[...], preferred_element_type=jnp.float32)
    h = jnp.maximum(h + b3_ref[...], 0.0).astype(jnp.bfloat16)

    out = jnp.dot(h, w4_ref[...], preferred_element_type=jnp.float32) + b4_ref[...]
    o_ref[...] = out.astype(o_ref.dtype)


# ---------------------------------------------------------------------------
# Parameter preparation: pad every layer width up to a multiple of 128 with
# zeros (mathematically a no-op for the original slice), cast weights to bf16,
# and keep each bias as its own lane-padded (1, Dout) f32 operand.
# ---------------------------------------------------------------------------
def prepare_params(params):
    weights = []
    biases = []
    for w, b in params:
        din = _round_up(w.shape[0], 128)
        dout = _round_up(w.shape[1], 128)
        wp = jnp.zeros((din, dout), jnp.float32).at[: w.shape[0], : w.shape[1]].set(w)
        bp = jnp.zeros((1, dout), jnp.float32).at[0, : w.shape[1]].set(b.reshape(-1))
        weights.append(wp.astype(jnp.bfloat16))
        biases.append(bp)
    return tuple(weights) + tuple(biases)


# ---------------------------------------------------------------------------
# Wrapper: grid over the batch dimension; weights/biases held VMEM-resident
# (constant index_map => one-time DMA, revisited buffers).
# ---------------------------------------------------------------------------
def cnn_forward(x, prepared, n_labels, batch_tile=1024):
    w1, w2, w3, w4, b1, b2, b3, b4 = prepared

    B = x.shape[0]
    x2d = x.reshape(B, -1)
    d_in = x2d.shape[1]
    D0 = w1.shape[0]   # padded input width
    D1 = w1.shape[1]
    D2 = w2.shape[1]
    D3 = w3.shape[1]
    D4 = w4.shape[1]   # padded output width

    # Batch tile: sublane(8)-aligned, capped at `batch_tile`, and sized so that
    # batches big enough to split get >= 2 grid steps (keeps both v7x TCs busy
    # under dimension_semantics=("parallel",)).
    min_steps = 2 if B >= 16 else 1
    TB = min(batch_tile, _round_up(-(-B // min_steps), 8))
    Bp = _round_up(B, TB)

    # bf16 activations into the kernel (halves x DMA + double-buffered x VMEM).
    x2d = jnp.pad(x2d.astype(jnp.bfloat16), ((0, Bp - B), (0, D0 - d_in)))

    grid = (Bp // TB,)

    # --- VMEM budget (with headroom, clamped to v7x's 64 MiB physical VMEM) ---
    weight_bytes = sum(int(w.size) * w.dtype.itemsize for w in (w1, w2, w3, w4))
    bias_bytes = sum(int(b.size) * b.dtype.itemsize for b in (b1, b2, b3, b4))
    tile_bytes = TB * (D0 * 2 + D4 * 4)                 # x (bf16) + out (f32) tiles
    inter_bytes = TB * ((D1 + D2 + D3) * 6 + D4 * 4)    # f32 acc + bf16 copy per layer
    vmem_est = 2 * weight_bytes + 2 * bias_bytes + 2 * tile_bytes + inter_bytes
    vmem_limit = int(min(max(vmem_est * 3 // 2 + (2 << 20), 32 << 20), 64 << 20))

    flops = 2 * Bp * (D0 * D1 + D1 * D2 + D2 * D3 + D3 * D4)
    bytes_accessed = (weight_bytes + bias_bytes
                      + int(x2d.size) * 2 + Bp * D4 * 4)

    out = pl.pallas_call(
        mlp_kernel,
        out_shape=jax.ShapeDtypeStruct((Bp, D4), jnp.float32),
        grid=grid,
        in_specs=[
            pl.BlockSpec((TB, D0), lambda i: (i, 0)),     # activations: per batch tile
            pl.BlockSpec(w1.shape, lambda i: (0, 0)),     # weights: VMEM-resident
            pl.BlockSpec(w2.shape, lambda i: (0, 0)),
            pl.BlockSpec(w3.shape, lambda i: (0, 0)),
            pl.BlockSpec(w4.shape, lambda i: (0, 0)),
            pl.BlockSpec(b1.shape, lambda i: (0, 0)),     # biases: VMEM-resident
            pl.BlockSpec(b2.shape, lambda i: (0, 0)),
            pl.BlockSpec(b3.shape, lambda i: (0, 0)),
            pl.BlockSpec(b4.shape, lambda i: (0, 0)),
        ],
        out_specs=pl.BlockSpec((TB, D4), lambda i: (i, 0)),
        compiler_params=pltpu.CompilerParams(
            dimension_semantics=("parallel",),
            vmem_limit_bytes=vmem_limit,
        ),
        cost_estimate=pl.CostEstimate(flops=flops, transcendentals=0,
                                      bytes_accessed=bytes_accessed),
    )(x2d, w1, w2, w3, w4, b1, b2, b3, b4)

    return out[:B, :n_labels]


# ---------------------------------------------------------------------------
# Deterministic parameter init (PyTorch nn.Linear-style uniform(-k, k), k=1/sqrt(fan_in))
# ---------------------------------------------------------------------------
def init_linear(key, fan_in, fan_out):
    kw, kb = jax.random.split(key)
    bound = 1.0 / jnp.sqrt(jnp.float32(fan_in))
    w = jax.random.uniform(kw, (fan_in, fan_out), jnp.float32, -bound, bound)
    b = jax.random.uniform(kb, (1, fan_out), jnp.float32, -bound, bound)
    return w, b


def init_params(key,
                n_components=10,
                fc1_amount_output_nodes=1000,
                fc2_amount_output_nodes=500,
                fc3_amount_output_node=100,
                amount_of_labels=3):
    k1, k2, k3, k4 = jax.random.split(key, 4)
    return (
        init_linear(k1, n_components, fc1_amount_output_nodes),
        init_linear(k2, fc1_amount_output_nodes, fc2_amount_output_nodes),
        init_linear(k3, fc2_amount_output_nodes, fc3_amount_output_node),
        init_linear(k4, fc3_amount_output_node, amount_of_labels),
    )


# Mixed-precision reference matching the kernel's numerics (bf16 matmul operands,
# f32 accumulate / bias / ReLU) on the *unpadded* shapes.
def ref_forward(x, params):
    (w1, b1), (w2, b2), (w3, b3), (w4, b4) = params
    h = x.reshape(x.shape[0], -1).astype(jnp.float32)
    for w, b in ((w1, b1), (w2, b2), (w3, b3)):
        h = jnp.dot(h.astype(jnp.bfloat16), w.astype(jnp.bfloat16),
                    preferred_element_type=jnp.float32) + b
        h = jnp.maximum(h, 0.0)
    return jnp.dot(h.astype(jnp.bfloat16), w4.astype(jnp.bfloat16),
                   preferred_element_type=jnp.float32) + b4


# TODO(synk): conv/batchnorm/maxpool/dropout layers are constructed in CNN.__init__
# but never used by CNN.forward, so they are intentionally not implemented here.

if __name__ == "__main__":
    key = jax.random.PRNGKey(0)
    kp, kx = jax.random.split(key)

    batch = 2
    n_components = 10
    amount_of_labels = 3

    params = init_params(kp, n_components=n_components,
                         amount_of_labels=amount_of_labels)
    prepared = prepare_params(params)

    # forward() only uses the fully-connected path: input flattens to n_components=10
    x = jax.random.normal(kx, (batch, n_components), jnp.float32)

    out = cnn_forward(x, prepared, n_labels=amount_of_labels)
    out = jax.block_until_ready(out)

    ref = ref_forward(x, params)
    assert out.shape == (batch, amount_of_labels)
    max_err = float(jnp.max(jnp.abs(out - ref)))
    assert jnp.allclose(out, ref, atol=2e-3, rtol=2e-3), f"max abs err {max_err}"

    print("KERNEL_OK")
</pallas_src>

<mosaic_0001>
module attributes {stable_mosaic.version = 11 : i64} {
  func.func @mlp_kernel(%arg0: i32, %arg1: memref<8x128xbf16, #tpu.memory_space<vmem>>, %arg2: memref<128x1024xbf16, #tpu.memory_space<vmem>>, %arg3: memref<1024x512xbf16, #tpu.memory_space<vmem>>, %arg4: memref<512x128xbf16, #tpu.memory_space<vmem>>, %arg5: memref<128x128xbf16, #tpu.memory_space<vmem>>, %arg6: memref<1x1024xf32, #tpu.memory_space<vmem>>, %arg7: memref<1x512xf32, #tpu.memory_space<vmem>>, %arg8: memref<1x128xf32, #tpu.memory_space<vmem>>, %arg9: memref<1x128xf32, #tpu.memory_space<vmem>>, %arg10: memref<8x128xf32, #tpu.memory_space<vmem>>) attributes {dimension_semantics = [#tpu.dimension_semantics<parallel>], iteration_bounds = array<i64: 1>, scalar_prefetch = 0 : i64, scratch_operands = 0 : i64, tpu.core_type = #tpu.core_type<tc>, window_params = [{transform_indices = @transform_0, window_bounds = array<i64: 8, 128>}, {pipeline_mode = #tpu.pipeline_mode<synchronous>, transform_indices = @transform_1, window_bounds = array<i64: 128, 1024>}, {pipeline_mode = #tpu.pipeline_mode<synchronous>, transform_indices = @transform_2, window_bounds = array<i64: 1024, 512>}, {pipeline_mode = #tpu.pipeline_mode<synchronous>, transform_indices = @transform_3, window_bounds = array<i64: 512, 128>}, {pipeline_mode = #tpu.pipeline_mode<synchronous>, transform_indices = @transform_4, window_bounds = array<i64: 128, 128>}, {pipeline_mode = #tpu.pipeline_mode<synchronous>, transform_indices = @transform_5, window_bounds = array<i64: 1, 1024>}, {pipeline_mode = #tpu.pipeline_mode<synchronous>, transform_indices = @transform_6, window_bounds = array<i64: 1, 512>}, {pipeline_mode = #tpu.pipeline_mode<synchronous>, transform_indices = @transform_7, window_bounds = array<i64: 1, 128>}, {pipeline_mode = #tpu.pipeline_mode<synchronous>, transform_indices = @transform_8, window_bounds = array<i64: 1, 128>}, {transform_indices = @transform_9, window_bounds = array<i64: 8, 128>}]} {
    %c0 = arith.constant 0 : index
    %c0_0 = arith.constant 0 : index
    %0 = vector.load %arg1[%c0, %c0_0] : memref<8x128xbf16, #tpu.memory_space<vmem>>, vector<8x128xbf16>
    %c0_1 = arith.constant 0 : index
    %c0_2 = arith.constant 0 : index
    %1 = vector.load %arg2[%c0_1, %c0_2] : memref<128x1024xbf16, #tpu.memory_space<vmem>>, vector<128x1024xbf16>
    %cst = arith.constant dense<0.000000e+00> : vector<8x1024xf32>
    %2 = tpu.matmul %0, %1, %cst {dimension_numbers = #tpu.dot_dimension_numbers<[1], [0], [0], [1], [0, 0, 1, 1], [], []>} : vector<8x128xbf16>, vector<128x1024xbf16>, vector<8x1024xf32> -> vector<8x1024xf32>
    %c0_3 = arith.constant 0 : index
    %c0_4 = arith.constant 0 : index
    %3 = vector.load %arg6[%c0_3, %c0_4] : memref<1x1024xf32, #tpu.memory_space<vmem>>, vector<1x1024xf32>
    %4 = vector.broadcast %3 : vector<1x1024xf32> to vector<8x1024xf32>
    %5 = arith.addf %2, %4 : vector<8x1024xf32>
    %cst_5 = arith.constant 0.000000e+00 : f32
    %6 = vector.broadcast %cst_5 : f32 to vector<8x1024xf32>
    %7 = arith.maximumf %5, %6 : vector<8x1024xf32>
    %8 = arith.truncf %7 : vector<8x1024xf32> to vector<8x1024xbf16>
    %c0_6 = arith.constant 0 : index
    %c0_7 = arith.constant 0 : index
    %9 = vector.load %arg3[%c0_6, %c0_7] : memref<1024x512xbf16, #tpu.memory_space<vmem>>, vector<1024x512xbf16>
    %cst_8 = arith.constant dense<0.000000e+00> : vector<8x512xf32>
    %10 = tpu.matmul %8, %9, %cst_8 {dimension_numbers = #tpu.dot_dimension_numbers<[1], [0], [0], [1], [0, 0, 1, 1], [], []>} : vector<8x1024xbf16>, vector<1024x512xbf16>, vector<8x512xf32> -> vector<8x512xf32>
    %c0_9 = arith.constant 0 : index
    %c0_10 = arith.constant 0 : index
    %11 = vector.load %arg7[%c0_9, %c0_10] : memref<1x512xf32, #tpu.memory_space<vmem>>, vector<1x512xf32>
    %12 = vector.broadcast %11 : vector<1x512xf32> to vector<8x512xf32>
    %13 = arith.addf %10, %12 : vector<8x512xf32>
    %cst_11 = arith.constant 0.000000e+00 : f32
    %14 = vector.broadcast %cst_11 : f32 to vector<8x512xf32>
    %15 = arith.maximumf %13, %14 : vector<8x512xf32>
    %16 = arith.truncf %15 : vector<8x512xf32> to vector<8x512xbf16>
    %c0_12 = arith.constant 0 : index
    %c0_13 = arith.constant 0 : index
    %17 = vector.load %arg4[%c0_12, %c0_13] : memref<512x128xbf16, #tpu.memory_space<vmem>>, vector<512x128xbf16>
    %cst_14 = arith.constant dense<0.000000e+00> : vector<8x128xf32>
    %18 = tpu.matmul %16, %17, %cst_14 {dimension_numbers = #tpu.dot_dimension_numbers<[1], [0], [0], [1], [0, 0, 1, 1], [], []>} : vector<8x512xbf16>, vector<512x128xbf16>, vector<8x128xf32> -> vector<8x128xf32>
    %c0_15 = arith.constant 0 : index
    %c0_16 = arith.constant 0 : index
    %19 = vector.load %arg8[%c0_15, %c0_16] : memref<1x128xf32, #tpu.memory_space<vmem>>, vector<1x128xf32>
    %20 = vector.broadcast %19 : vector<1x128xf32> to vector<8x128xf32>
    %21 = arith.addf %18, %20 : vector<8x128xf32>
    %cst_17 = arith.constant 0.000000e+00 : f32
    %22 = vector.broadcast %cst_17 : f32 to vector<8x128xf32>
    %23 = arith.maximumf %21, %22 : vector<8x128xf32>
    %24 = arith.truncf %23 : vector<8x128xf32> to vector<8x128xbf16>
    %c0_18 = arith.constant 0 : index
    %c0_19 = arith.constant 0 : index
    %25 = vector.load %arg5[%c0_18, %c0_19] : memref<128x128xbf16, #tpu.memory_space<vmem>>, vector<128x128xbf16>
    %cst_20 = arith.constant dense<0.000000e+00> : vector<8x128xf32>
    %26 = tpu.matmul %24, %25, %cst_20 {dimension_numbers = #tpu.dot_dimension_numbers<[1], [0], [0], [1], [0, 0, 1, 1], [], []>} : vector<8x128xbf16>, vector<128x128xbf16>, vector<8x128xf32> -> vector<8x128xf32>
    %c0_21 = arith.constant 0 : index
    %c0_22 = arith.constant 0 : index
    %27 = vector.load %arg9[%c0_21, %c0_22] : memref<1x128xf32, #tpu.memory_space<vmem>>, vector<1x128xf32>
    %28 = vector.broadcast %27 : vector<1x128xf32> to vector<8x128xf32>
    %29 = arith.addf %26, %28 : vector<8x128xf32>
    %c0_23 = arith.constant 0 : index
    %c0_24 = arith.constant 0 : index
    %30 = vector.load %arg10[%c0_23, %c0_24] : memref<8x128xf32, #tpu.memory_space<vmem>>, vector<8x128xf32>
    tpu.vector_store %arg10[%c0_23, %c0_24], %29 {strides = array<i32>} : memref<8x128xf32, #tpu.memory_space<vmem>>, vector<8x128xf32>,
    return
  }
  func.func @transform_0(%arg0: i32) -> (i32, i32) {
    %c0_i32 = arith.constant 0 : i32
    %c0_i32_0 = arith.constant 0 : i32
    return %arg0, %c0_i32 : i32, i32
  }
  func.func @transform_1(%arg0: i32) -> (i32, i32) {
    %c0_i32 = arith.constant 0 : i32
    %c0_i32_0 = arith.constant 0 : i32
    %c0_i32_1 = arith.constant 0 : i32
    return %c0_i32, %c0_i32_0 : i32, i32
  }
  func.func @transform_2(%arg0: i32) -> (i32, i32) {
    %c0_i32 = arith.constant 0 : i32
    %c0_i32_0 = arith.constant 0 : i32
    %c0_i32_1 = arith.constant 0 : i32
    return %c0_i32, %c0_i32_0 : i32, i32
  }
  func.func @transform_3(%arg0: i32) -> (i32, i32) {
    %c0_i32 = arith.constant 0 : i32
    %c0_i32_0 = arith.constant 0 : i32
    %c0_i32_1 = arith.constant 0 : i32
    return %c0_i32, %c0_i32_0 : i32, i32
  }
  func.func @transform_4(%arg0: i32) -> (i32, i32) {
    %c0_i32 = arith.constant 0 : i32
    %c0_i32_0 = arith.constant 0 : i32
    %c0_i32_1 = arith.constant 0 : i32
    return %c0_i32, %c0_i32_0 : i32, i32
  }
  func.func @transform_5(%arg0: i32) -> (i32, i32) {
    %c0_i32 = arith.constant 0 : i32
    %c0_i32_0 = arith.constant 0 : i32
    %c0_i32_1 = arith.constant 0 : i32
    return %c0_i32, %c0_i32_0 : i32, i32
  }
  func.func @transform_6(%arg0: i32) -> (i32, i32) {
    %c0_i32 = arith.constant 0 : i32
    %c0_i32_0 = arith.constant 0 : i32
    %c0_i32_1 = arith.constant 0 : i32
    return %c0_i32, %c0_i32_0 : i32, i32
  }
  func.func @transform_7(%arg0: i32) -> (i32, i32) {
    %c0_i32 = arith.constant 0 : i32
    %c0_i32_0 = arith.constant 0 : i32
    %c0_i32_1 = arith.constant 0 : i32
    return %c0_i32, %c0_i32_0 : i32, i32
  }
  func.func @transform_8(%arg0: i32) -> (i32, i32) {
    %c0_i32 = arith.constant 0 : i32
    %c0_i32_0 = arith.constant 0 : i32
    %c0_i32_1 = arith.constant 0 : i32
    return %c0_i32, %c0_i32_0 : i32, i32
  }
  func.func @transform_9(%arg0: i32) -> (i32, i32) {
    %c0_i32 = arith.constant 0 : i32
    %c0_i32_0 = arith.constant 0 : i32
    return %arg0, %c0_i32 : i32, i32
  }
}

</mosaic_0001>

<bundles_post_ra>
// kernel: tpu_custom_call.1
= control target key start
LH: loop header
LB: loop body
LE: loop exit
PB: predicated region body
PF: predicated region fallthrough
CT: control target
= control target key end

     0   :  { %14 = vsyncpa [#allocation3], 0  ;;  %s4340_s0 = inlined_call_operand.hbm [shape: bf16[8,128], index: 0, kind: input, shape index: {}]   ;;  %s4341_s1 = inlined_call_operand.hbm [shape: bf16[128,1024], index: 1, kind: input, shape index: {}]   ;;  %s4342_s2 = inlined_call_operand.hbm [shape: bf16[1024,512], index: 2, kind: input, shape index: {}]   ;;  %s4343_s3 = inlined_call_operand.hbm [shape: bf16[512,128], index: 3, kind: input, shape index: {}]   ;;  %s4344_s4 = inlined_call_operand.hbm [shape: bf16[128,128], index: 4, kind: input, shape index: {}]   ;;  %s4345_s5 = inlined_call_operand.vmem [shape: f32[1,1024], index: 5, kind: input, shape index: {}]   ;;  %s4346_s6 = inlined_call_operand.vmem [shape: f32[1,512], index: 6, kind: input, shape index: {}]   ;;  %s4347_s7 = inlined_call_operand.vmem [shape: f32[1,128], index: 7, kind: input, shape index: {}]   ;;  %s4348_s8 = inlined_call_operand.vmem [shape: f32[1,128], index: 8, kind: input, shape index: {}]   ;;  %s4349_s9 = inlined_call_operand.hbm [shape: f32[8,128], index: 9, kind: output, shape index: {}]  }
   0x1   :  { %15 = vsyncpa [#allocation6], 0 }
   0x2   :  { %16 = vsyncpa [#allocation9], 0 }
   0x3   :  { %17 = vsyncpa [#allocation4], 0  ;;  %s4117_s30 = smov [#allocation5]   ;;  %s3977_s13 = scalar_lea.hbm %s4341_s1, 8192 }
   0x4   :  { %s33_s10 = sshll.u32 %s4117_s30, 4  ;;  %p3978_p0 = scmp.ne.s32.totalorder %s4341_s1, %s3977_s13  ;;  %s34_s10 = int_to_ptr.vmem [resolvable:$true] %s33_s10 }
   0x5   :  { %p3981_p1 = scmp.lt.u32.totalorder %s3977_s13, %s4341_s1 }
   0x7   :  { %p3983_p2 = pnand %p3981_p1, %p3978_p0 }
   0x9   :  { %3986 = shalt.err (!%p3983_p2)
}
   0xa   :  { %s3987_s18 = scalar_lea.vmem %s34_s10, 8192  ;;  %p3992_p4 = scmp.lt.s32.totalorder %s34_s10, %s34_s10 }
   0xb   :  { %p3988_p3 = scmp.ne.s32.totalorder %s34_s10, %s3987_s18  ;;  %p3993_p5 = scmp.lt.s32.totalorder %s3987_s18, %s3987_s18 }
   0xd   :  { %p3994_p6 = por %p3993_p5, %p3992_p4 }
   0xf   :  { %p3995_p7 = pnand %p3994_p6, %p3988_p3 }
  0x11   :  { %3998 = shalt.err (!%p3995_p7)
}
  0x12   :  { %s4118_s19 = smov 512   ;;  %s4119_s20 = smov 32  }
  0x13   :  { %39 = dma.hbm_to_vmem [thread:$0]  %s4341_s1, 8192, %s34_s10, [#allocation6], %s4118_s19, %s4118_s19, %s4119_s20  }
  0x14   :  { %s4120_s23 = smov [#allocation8]   ;;  %s3999_s27 = scalar_lea.hbm %s4343_s3, 4096 }
  0x15   :  { %s57_s24 = sshll.u32 %s4120_s23, 4  ;;  %p4000_p8 = scmp.ne.s32.totalorder %s4343_s3, %s3999_s27  ;;  %s58_s24 = int_to_ptr.vmem [resolvable:$true] %s57_s24 }
  0x16   :  { %p4003_p9 = scmp.lt.u32.totalorder %s3999_s27, %s4343_s3 }
  0x18   :  { %p4005_p10 = pnand %p4003_p9, %p4000_p8 }
  0x1a   :  { %4008 = shalt.err (!%p4005_p10)
}
  0x1b   :  { %s4009_s12 = scalar_lea.vmem %s58_s24, 4096  ;;  %p4014_p12 = scmp.lt.s32.totalorder %s58_s24, %s58_s24 }
  0x1c   :  { %p4010_p11 = scmp.ne.s32.totalorder %s58_s24, %s4009_s12  ;;  %p4015_p13 = scmp.lt.s32.totalorder %s4009_s12, %s4009_s12 }
  0x1e   :  { %p4016_p0 = por %p4015_p13, %p4014_p12 }
  0x20   :  { %p4017_p1 = pnand %p4016_p0, %p4010_p11 }
  0x22   :  { %4020 = shalt.err (!%p4017_p1)
}
  0x23   :  { %s4121_s1 = smov 64   ;;  %s4122_s10 = smov 4  }
  0x24   :  { %63 = dma.hbm_to_vmem [thread:$0]  %s4343_s3, 4096, %s58_s24, [#allocation9], %s4121_s1, %s4121_s1, %s4122_s10  }
  0x25   :  { %s4123_s15 = smov [#allocation2]   ;;  %s4124_s17 = smov [#allocation7]  }
  0x26   :  { %s24_s16 = sshll.u32 %s4123_s15, 4  ;;  %s45_s18 = sshll.u32 %s4124_s17, 4  ;;  %s25_s16 = int_to_ptr.vmem [resolvable:$true] %s24_s16  ;;  %s4209_s18 = int_to_ptr.vmem [resolvable:$true] %s45_s18 }
  0x27   :  { %s4021_s21 = scalar_lea.hbm %s4340_s0, 64 }
  0x28   :  { %p4022_p2 = scmp.ne.s32.totalorder %s4340_s0, %s4021_s21  ;;  %p4025_p3 = scmp.lt.u32.totalorder %s4021_s21, %s4340_s0 }
  0x2a   :  { %p4027_p4 = pnand %p4025_p3, %p4022_p2 }
  0x2c   :  { %4030 = shalt.err (!%p4027_p4)
}
  0x2d   :  { %s4031_s3 = scalar_lea.vmem %s25_s16, 64  ;;  %p4036_p6 = scmp.lt.s32.totalorder %s25_s16, %s25_s16 }
  0x2e   :  { %p4032_p5 = scmp.ne.s32.totalorder %s25_s16, %s4031_s3  ;;  %p4037_p7 = scmp.lt.s32.totalorder %s4031_s3, %s4031_s3 }
  0x30   :  { %p4038_p8 = por %p4037_p7, %p4036_p6 }
  0x32   :  { %p4039_p9 = pnand %p4038_p8, %p4032_p5 }
  0x34   :  { %4042 = shalt.err (!%p4039_p9)
}
  0x35   :  { %27 = dma.hbm_to_vmem [thread:$0]  %s4340_s0, 64, %s25_s16, [#allocation3]  }
  0x36   :  { %s4043_s30 = scalar_lea.hbm %s4342_s2, 32768 }
  0x37   :  { %p4044_p10 = scmp.ne.s32.totalorder %s4342_s2, %s4043_s30  ;;  %p4047_p11 = scmp.lt.u32.totalorder %s4043_s30, %s4342_s2 }
  0x39   :  { %p4049_p12 = pnand %p4047_p11, %p4044_p10 }
  0x3b   :  { %4052 = shalt.err (!%p4049_p12)
}
  0x3c   :  { %s4053_s15 = scalar_lea.vmem %s4209_s18, 32768  ;;  %p4058_p0 = scmp.lt.s32.totalorder %s4209_s18, %s4209_s18 }
  0x3d   :  { %p4054_p13 = scmp.ne.s32.totalorder %s4209_s18, %s4053_s15  ;;  %p4059_p1 = scmp.lt.s32.totalorder %s4053_s15, %s4053_s15 }
  0x3f   :  { %p4060_p2 = por %p4059_p1, %p4058_p0 }
  0x41   :  { %p4061_p3 = pnand %p4060_p2, %p4054_p13 }
  0x43   :  { %4064 = shalt.err (!%p4061_p3)
}
  0x44   :  { %s4125_s0 = smov 256   ;;  %s4126_s16 = smov 16  }
  0x45   :  { %51 = dma.hbm_to_vmem [thread:$0]  %s4342_s2, 32768, %s4209_s18, [#allocation6], %s4125_s0, %s4125_s0, %s4126_s16  }
  0x46   :  { %s4127_s20 = smov [#allocation10]   ;;  %s4065_s25 = scalar_lea.hbm %s4344_s4, 1024 }
  0x47   :  { %s69_s21 = sshll.u32 %s4127_s20, 4  ;;  %p4066_p4 = scmp.ne.s32.totalorder %s4344_s4, %s4065_s25  ;;  %s70_s21 = int_to_ptr.vmem [resolvable:$true] %s69_s21 }
  0x48   :  { %p4069_p5 = scmp.lt.u32.totalorder %s4065_s25, %s4344_s4 }
  0x4a   :  { %p4071_p6 = pnand %p4069_p5, %p4066_p4 }
  0x4c   :  { %4074 = shalt.err (!%p4071_p6)
}
  0x4d   :  { %s4075_s28 = scalar_lea.vmem %s70_s21, 1024  ;;  %p4080_p8 = scmp.lt.s32.totalorder %s70_s21, %s70_s21 }
  0x4e   :  { %p4076_p7 = scmp.ne.s32.totalorder %s70_s21, %s4075_s28  ;;  %p4081_p9 = scmp.lt.s32.totalorder %s4075_s28, %s4075_s28 }
  0x50   :  { %p4082_p10 = por %p4081_p9, %p4080_p8 }
  0x52   :  { %p4083_p11 = pnand %p4082_p10, %p4076_p7 }
  0x54   :  { %4086 = shalt.err (!%p4083_p11)
}
  0x55   :  { %75 = dma.hbm_to_vmem [thread:$0]  %s4344_s4, 1024, %s70_s21, [#allocation9], %s4121_s1, %s4121_s1, %s4122_s10  }
  0x56   :  { %4109 = dma.done.wait [#allocation3], 64  }
  0x57   :  { %4110 = vsyncadd [#allocation3], 4294967232 }
  0x58   :  { %4111 = dma.done.wait [#allocation6], 40960  }
  0x59   :  { %4112 = vsyncadd [#allocation6], 4294926336 }
  0x5a   :  { %4113 = dma.done.wait [#allocation9], 5120  }
  0x5b   :  { %4114 = vsyncadd [#allocation9], 4294962176  ;;  %v4128_v0 = vmov 0   ;;  %v101_v1 = vld [vmem:[#allocation5] sm:$0xff]  ;;  %v102_v14 = vld [vmem:[#allocation5 + $0x8] sm:$0xff]  ;;  %vm4130_vm0 = vmmov 0  }
  0x5c   :  { %559 = vmatprep.mubr.bf16.mxu0 %v4128_v0  ;;  %600 = vmatprep.mubr.bf16.mxu1 %v4128_v0  ;;  %v105_v2 = vld [vmem:[#allocation5 + $0x20] sm:$0xff]  ;;  %v106_v15 = vld [vmem:[#allocation5 + $0x28] sm:$0xff]  ;;  %v103_v58 = vld [vmem:[#allocation5 + $0x10] sm:$0xff]  ;;  %s4131_s12 = smov [#allocation11]  }
  0x5d   :  { %v109_v3 = vld [vmem:[#allocation5 + $0x40] sm:$0xff]  ;;  %v3076_v4 = vcombine.high %v101_v1, %v105_v2  ;;  %v3075_v5 = vcombine.low %v101_v1, %v105_v2  ;;  %v110_v16 = vld [vmem:[#allocation5 + $0x48] sm:$0xff]  ;;  %v3078_v18 = vcombine.high %v102_v14, %v106_v15  ;;  %v3077_v19 = vcombine.low %v102_v14, %v106_v15  ;;  %v107_v59 = vld [vmem:[#allocation5 + $0x30] sm:$0xff]  ;;  %s3064_s13 = sshll.u32 %s4131_s12, 4  ;;  %s3065_s13 = int_to_ptr.vmem [resolvable:$true] %s3064_s13 }
  0x5e   :  { %v113_v6 = vld [vmem:[#allocation5 + $0x60] sm:$0xff]  ;;  %v114_v17 = vld [vmem:[#allocation5 + $0x68] sm:$0xff]  ;;  %v3080_v1 = vcombine.high %v103_v58, %v107_v59  ;;  %v4257_v2 = vld [vmem:[#allocation2] sm:$0xf]  ;;  %p4092_p13 = scmp.lt.s32.totalorder %s3065_s13, %s3065_s13 }
  0x5f   :  { %v3084_v7 = vcombine.high %v109_v3, %v113_v6  ;;  %v117_v8 = vld [vmem:[#allocation5 + $0x80] sm:$0xff]  ;;  %527 = vmatprep.subr.bf16.mxu0 %v3076_v4  ;;  %v3083_v10 = vcombine.low %v109_v3, %v113_v6  ;;  %v3086_v20 = vcombine.high %v110_v16, %v114_v17  ;;  %v118_v22 = vld [vmem:[#allocation5 + $0x88] sm:$0xff]  ;;  %568 = vmatprep.subr.bf16.mxu1 %v3078_v18  ;;  %v111_v4 = vld [vmem:[#allocation5 + $0x50] sm:$0xff] }
  0x60   :  { %v121_v9 = vld [vmem:[#allocation5 + $0xa0] sm:$0xff]  ;;  %528 = vmatpush1.bf16.msra.mxu0 %v3075_v5  ;;  %v122_v23 = vld [vmem:[#allocation5 + $0xa8] sm:$0xff]  ;;  %569 = vmatpush1.bf16.msra.mxu1 %v3077_v19  ;;  %v3085_v27 = vcombine.low %v110_v16, %v114_v17  ;;  %v115_v5 = vld [vmem:[#allocation5 + $0x70] sm:$0xff] }
  0x61   :  { %529 = vmatprep.subr.bf16.mxu0 %v3084_v7  ;;  %v3092_v11 = vcombine.high %v117_v8, %v121_v9  ;;  %v125_v12 = vld [vmem:[#allocation5 + $0xc0] sm:$0xff]  ;;  %v3091_v21 = vcombine.low %v117_v8, %v121_v9  ;;  %570 = vmatprep.subr.bf16.mxu1 %v3086_v20  ;;  %v3094_v28 = vcombine.high %v118_v22, %v122_v23  ;;  %v126_v30 = vld [vmem:[#allocation5 + $0xc8] sm:$0xff]  ;;  %v104_v7 = vld [vmem:[#allocation5 + $0x18] sm:$0xff] }
  0x62   :  { %v129_v13 = vld [vmem:[#allocation5 + $0xe0] sm:$0xff]  ;;  %v130_v31 = vld [vmem:[#allocation5 + $0xe8] sm:$0xff]  ;;  %v3093_v35 = vcombine.low %v118_v22, %v122_v23  ;;  %v3079_v8 = vcombine.low %v103_v58, %v107_v59  ;;  %v108_v9 = vld [vmem:[#allocation5 + $0x38] sm:$0xff]  ;;  %v3087_v16 = vcombine.low %v111_v4, %v115_v5 }
  0x63   :  { %v3100_v24 = vcombine.high %v125_v12, %v129_v13  ;;  %v133_v25 = vld [vmem:[#allocation5 + $0x100] sm:$0xff]  ;;  %v3099_v29 = vcombine.low %v125_v12, %v129_v13  ;;  %v3102_v36 = vcombine.high %v126_v30, %v130_v31  ;;  %v134_v38 = vld [vmem:[#allocation5 + $0x108] sm:$0xff]  ;;  %v3101_v43 = vcombine.low %v126_v30, %v130_v31  ;;  %v119_v12 = vld [vmem:[#allocation5 + $0x90] sm:$0xff] }
  0x64   :  { %530 = vmatpush1.bf16.msra.mxu0 %v3083_v10  ;;  %v137_v26 = vld [vmem:[#allocation5 + $0x120] sm:$0xff]  ;;  %571 = vmatpush1.bf16.msra.mxu1 %v3085_v27  ;;  %v138_v39 = vld [vmem:[#allocation5 + $0x128] sm:$0xff]  ;;  %v3088_v10 = vcombine.high %v111_v4, %v115_v5  ;;  %v123_v13 = vld [vmem:[#allocation5 + $0xb0] sm:$0xff]  ;;  %v3082_v14 = vcombine.high %v104_v7, %v108_v9 }
  0x65   :  { %531 = vmatprep.subr.bf16.mxu0 %v3092_v11  ;;  %v3108_v32 = vcombine.high %v133_v25, %v137_v26  ;;  %v141_v33 = vld [vmem:[#allocation5 + $0x140] sm:$0xff]  ;;  %572 = vmatprep.subr.bf16.mxu1 %v3094_v28  ;;  %v3107_v37 = vcombine.low %v133_v25, %v137_v26  ;;  %v3110_v44 = vcombine.high %v134_v38, %v138_v39  ;;  %v142_v46 = vld [vmem:[#allocation5 + $0x148] sm:$0xff]  ;;  %v112_v15 = vld [vmem:[#allocation5 + $0x58] sm:$0xff] }
  0x66   :  { %v145_v34 = vld [vmem:[#allocation5 + $0x160] sm:$0xff]  ;;  %v146_v47 = vld [vmem:[#allocation5 + $0x168] sm:$0xff]  ;;  %v3109_v51 = vcombine.low %v134_v38, %v138_v39  ;;  %v116_v17 = vld [vmem:[#allocation5 + $0x78] sm:$0xff]  ;;  %v3096_v18 = vcombine.high %v119_v12, %v123_v13 }
  0x67   :  { %v3116_v40 = vcombine.high %v141_v33, %v145_v34  ;;  %v149_v41 = vld [vmem:[#allocation5 + $0x180] sm:$0xff]  ;;  %v3115_v45 = vcombine.low %v141_v33, %v145_v34  ;;  %v3118_v52 = vcombine.high %v142_v46, %v146_v47  ;;  %v150_v53 = vld [vmem:[#allocation5 + $0x188] sm:$0xff]  ;;  %v3117_v57 = vcombine.low %v142_v46, %v146_v47  ;;  %v127_v19 = vld [vmem:[#allocation5 + $0xd0] sm:$0xff] }
  0x68   :  { %532 = vmatpush1.bf16.msra.mxu0 %v3091_v21  ;;  %v153_v42 = vld [vmem:[#allocation5 + $0x1a0] sm:$0xff]  ;;  %573 = vmatpush1.bf16.msra.mxu1 %v3093_v35  ;;  %v154_v55 = vld [vmem:[#allocation5 + $0x1a8] sm:$0xff]  ;;  %v131_v20 = vld [vmem:[#allocation5 + $0xf0] sm:$0xff]  ;;  %v3081_v21 = vcombine.low %v104_v7, %v108_v9  ;;  %v3090_v22 = vcombine.high %v112_v15, %v116_v17 }
  0x69   :  { %533 = vmatprep.subr.bf16.mxu0 %v3100_v24  ;;  %574 = vmatprep.subr.bf16.mxu1 %v3102_v36  ;;  %v3124_v48 = vcombine.high %v149_v41, %v153_v42  ;;  %v157_v49 = vld [vmem:[#allocation5 + $0x1c0] sm:$0xff]  ;;  %v3123_v54 = vcombine.low %v149_v41, %v153_v42  ;;  %v3126_v60 = vcombine.high %v150_v53, %v154_v55  ;;  %v158_v61 = vld [vmem:[#allocation5 + $0x1c8] sm:$0xff]  ;;  %v120_v23 = vld [vmem:[#allocation5 + $0x98] sm:$0xff] }
  0x6a   :  { %v161_v50 = vld [vmem:[#allocation5 + $0x1e0] sm:$0xff]  ;;  %v162_v63 = vld [vmem:[#allocation5 + $0x1e8] sm:$0xff]  ;;  %v3125_v3 = vcombine.low %v150_v53, %v154_v55  ;;  %v3095_v24 = vcombine.low %v119_v12, %v123_v13  ;;  %v124_v25 = vld [vmem:[#allocation5 + $0xb8] sm:$0xff]  ;;  %v3104_v26 = vcombine.high %v127_v19, %v131_v20 }
  0x6b   :  { %v3132_v56 = vcombine.high %v157_v49, %v161_v50  ;;  %v3131_v62 = vcombine.low %v157_v49, %v161_v50  ;;  %v3134_v6 = vcombine.high %v158_v61, %v162_v63  ;;  %v3133_v11 = vcombine.low %v158_v61, %v162_v63  ;;  %v135_v27 = vld [vmem:[#allocation5 + $0x110] sm:$0xff]  ;;  %v128_v31 = vld [vmem:[#allocation5 + $0xd8] sm:$0xff] }
  0x6c   :  { %534 = vmatpush1.bf16.msra.mxu0 %v3099_v29  ;;  %575 = vmatpush1.bf16.msra.mxu1 %v3101_v43  ;;  %v139_v28 = vld [vmem:[#allocation5 + $0x130] sm:$0xff]  ;;  %v3089_v29 = vcombine.low %v112_v15, %v116_v17  ;;  %v3098_v30 = vcombine.high %v120_v23, %v124_v25  ;;  %v132_v33 = vld [vmem:[#allocation5 + $0xf8] sm:$0xff] }
  0x6d   :  { %535 = vmatprep.subr.bf16.mxu0 %v3108_v32  ;;  %576 = vmatprep.subr.bf16.mxu1 %v3110_v44  ;;  %v3103_v32 = vcombine.low %v127_v19, %v131_v20  ;;  %v3112_v34 = vcombine.high %v135_v27, %v139_v28  ;;  %v143_v35 = vld [vmem:[#allocation5 + $0x150] sm:$0xff]  ;;  %v3106_v38 = vcombine.high %v128_v31, %v132_v33  ;;  %v136_v39 = vld [vmem:[#allocation5 + $0x118] sm:$0xff] }
  0x6e   :  { %v147_v36 = vld [vmem:[#allocation5 + $0x170] sm:$0xff]  ;;  %v140_v41 = vld [vmem:[#allocation5 + $0x138] sm:$0xff]  ;;  %v3105_v44 = vcombine.low %v128_v31, %v132_v33 }
  0x6f   :  { %v151_v42 = vld [vmem:[#allocation5 + $0x190] sm:$0xff]  ;;  %v144_v46 = vld [vmem:[#allocation5 + $0x158] sm:$0xff]  ;;  %v3119_v47 = vcombine.low %v143_v35, %v147_v36 }
  0x70   :  { %536 = vmatpush1.bf16.msra.mxu0 %v3107_v37  ;;  %577 = vmatpush1.bf16.msra.mxu1 %v3109_v51  ;;  %v3097_v37 = vcombine.low %v120_v23, %v124_v25  ;;  %v155_v43 = vld [vmem:[#allocation5 + $0x1b0] sm:$0xff]  ;;  %v160_v59 = vld [vmem:[#allocation5 + $0x1d8] sm:$0xff] }
  0x71   :  { %537 = vmatprep.subr.bf16.mxu0 %v3116_v40  ;;  %578 = vmatprep.subr.bf16.mxu1 %v3118_v52  ;;  %v3111_v40 = vcombine.low %v135_v27, %v139_v28  ;;  %v3128_v49 = vcombine.high %v151_v42, %v155_v43  ;;  %v159_v50 = vld [vmem:[#allocation5 + $0x1d0] sm:$0xff]  ;;  %v3113_v52 = vcombine.low %v136_v39, %v140_v41  ;;  %v3570_v15 = vld [vmem:[#allocation7 + $0x4c] ss:$16 sps:$4 sm:$0xff]   ;;  %v3580_v25 = vld [vmem:[#allocation7 + $0x88] ss:$16 sps:$4 sm:$0xff]  }
  0x72   :  { %v163_v51 = vld [vmem:[#allocation5 + $0x1f0] sm:$0xff]  ;;  %v3127_v55 = vcombine.low %v151_v42, %v155_v43  ;;  %v3576_v19 = vld [vmem:[#allocation7 + $0x6c] ss:$16 sps:$4 sm:$0xff]   ;;  %v3592_v33 = vld [vmem:[#allocation7 + $0xc8] ss:$16 sps:$4 sm:$0xff]  }
  0x73   :  { %v3135_v63 = vcombine.low %v159_v50, %v163_v51  ;;  %v3561_v5 = vld [vmem:[#allocation7 + $0x24] ss:$16 sps:$4 sm:$0xff]   ;;  %v3565_v12 = vld [vmem:[#allocation7 + $0x40] ss:$16 sps:$4 sm:$0xff]   ;;  %v3582_v23 = vld [vmem:[#allocation7 + $0x8c] ss:$16 sps:$4 sm:$0xff]  }
  0x74   :  { %538 = vmatpush1.bf16.msra.mxu0 %v3115_v45  ;;  %579 = vmatpush1.bf16.msra.mxu1 %v3117_v57  ;;  %v3114_v45 = vcombine.high %v136_v39, %v140_v41  ;;  %v3136_v57 = vcombine.high %v159_v50, %v163_v51  ;;  %v3567_v9 = vld [vmem:[#allocation7 + $0x44] ss:$16 sps:$4 sm:$0xff]   ;;  %v3577_v20 = vld [vmem:[#allocation7 + $0x80] ss:$16 sps:$4 sm:$0xff]   ;;  %v3604_v41 = vld [vmem:[#allocation7 + $0x108] ss:$16 sps:$4 sm:$0xff]  }
  0x75   :  { %539 = vmatprep.subr.bf16.mxu0 %v3124_v48  ;;  %580 = vmatprep.subr.bf16.mxu1 %v3126_v60  ;;  %v148_v48 = vld [vmem:[#allocation5 + $0x178] sm:$0xff]  ;;  %v3573_v13 = vld [vmem:[#allocation7 + $0x64] ss:$16 sps:$4 sm:$0xff]   ;;  %v3589_v27 = vld [vmem:[#allocation7 + $0xc0] ss:$16 sps:$4 sm:$0xff]  }
  0x76   :  { %v3122_v53 = vcombine.high %v144_v46, %v148_v48  ;;  %v3121_v58 = vcombine.low %v144_v46, %v148_v48  ;;  %v164_v60 = vld [vmem:[#allocation5 + $0x1f8] sm:$0xff]  ;;  %v3579_v17 = vld [vmem:[#allocation7 + $0x84] ss:$16 sps:$4 sm:$0xff]   ;;  %v3595_v31 = vld [vmem:[#allocation7 + $0xe0] ss:$16 sps:$4 sm:$0xff]  }
  0x77   :  { %v3138_v4 = vcombine.high %v160_v59, %v164_v60  ;;  %v3137_v7 = vcombine.low %v160_v59, %v164_v60  ;;  %v3597_v28 = vld [vmem:[#allocation7 + $0xe4] ss:$16 sps:$4 sm:$0xff]   ;;  %v3607_v39 = vld [vmem:[#allocation7 + $0x120] ss:$16 sps:$4 sm:$0xff]   ;;  %v3616_v48 = vld [vmem:[#allocation7 + $0x148] ss:$16 sps:$4 sm:$0xff]  }
  0x78   :  { %540 = vmatpush1.bf16.msra.mxu0 %v3123_v54  ;;  %581 = vmatpush1.bf16.msra.mxu1 %v3125_v3  ;;  %v152_v54 = vld [vmem:[#allocation5 + $0x198] sm:$0xff]  ;;  %v3553_v3 = vld [vmem:[#allocation7] ss:$16 sps:$4 sm:$0xff]   ;;  %v3621_v43 = vld [vmem:[#allocation7 + $0x164] ss:$16 sps:$4 sm:$0xff]  }
  0x79   :  { %541 = vmatprep.subr.bf16.mxu0 %v3132_v56  ;;  %582 = vmatprep.subr.bf16.mxu1 %v3134_v6  ;;  %v156_v56 = vld [vmem:[#allocation5 + $0x1b8] sm:$0xff]  ;;  %v3613_v42 = vld [vmem:[#allocation7 + $0x140] ss:$16 sps:$4 sm:$0xff]   ;;  %v3633_v51 = vld [vmem:[#allocation7 + $0x1a4] ss:$16 sps:$4 sm:$0xff]  }
  0x7a   :  { %v3130_v61 = vcombine.high %v152_v54, %v156_v56  ;;  %v3558_v6 = vld [vmem:[#allocation7 + $0xc] ss:$16 sps:$4 sm:$0xff]   ;;  %v3619_v46 = vld [vmem:[#allocation7 + $0x160] ss:$16 sps:$4 sm:$0xff]  }
  0x7b   :  { %v3625_v50 = vld [vmem:[#allocation7 + $0x180] ss:$16 sps:$4 sm:$0xff]   ;;  %v3642_v60 = vld [vmem:[#allocation7 + $0x1cc] ss:$16 sps:$4 sm:$0xff]  }
  0x7c   :  { %542 = vmatpush1.bf16.msra.mxu0 %v3131_v62  ;;  %583 = vmatpush1.bf16.msra.mxu1 %v3133_v11  ;;  %v3555_v62 = vld [vmem:[#allocation7 + $0x4] ss:$16 sps:$4 sm:$0xff]   ;;  %v3564_v11 = vld [vmem:[#allocation7 + $0x2c] ss:$16 sps:$4 sm:$0xff]   ;;  %v3637_v59 = vld [vmem:[#allocation7 + $0x1c0] ss:$16 sps:$4 sm:$0xff]  }
  0x7d   :  { %609 = vmatprep.subr.bf16.mxu0 %v3080_v1  ;;  %650 = vmatprep.subr.bf16.mxu1 %v3082_v14  ;;  %v3129_v1 = vcombine.low %v152_v54, %v156_v56  ;;  %v3562_v14 = vld [vmem:[#allocation7 + $0x28] ss:$16 sps:$4 sm:$0xff]   ;;  %v3636_v56 = vld [vmem:[#allocation7 + $0x1ac] ss:$16 sps:$4 sm:$0xff]  }
  0x7e   :  { %v3628_v54 = vld [vmem:[#allocation7 + $0x188] ss:$16 sps:$4 sm:$0xff]  }
  0x7f   :  { %560 = vmatmul.mubr.bf16.vlgmr.msra.gmra.mrb[0].mxu0 %v4257_v2  ;;  %601 = vmatmul.mubr.bf16.vlgmr.msra.gmra.mrb[0].mxu1 %v4257_v2 }
  0x80   :  { %610 = vmatpush1.bf16.msra.mxu0 %v3079_v8  ;;  %641 = vmatprep.mubr.bf16.mxu0 %v4128_v0  ;;  %v3559_v8 = vld [vmem:[#allocation7 + $0x20] ss:$16 sps:$4 sm:$0xff]  }
  0x81   :  { %611 = vmatprep.subr.bf16.mxu0 %v3088_v10  ;;  %651 = vmatpush1.bf16.msra.mxu1 %v3081_v21  ;;  %v3556_v10 = vld [vmem:[#allocation7 + $0x8] ss:$16 sps:$4 sm:$0xff]   ;;  %v3585_v21 = vld [vmem:[#allocation7 + $0xa4] ss:$16 sps:$4 sm:$0xff]  }
  0x82   :  { %682 = vmatprep.mubr.bf16.mxu1 %v4128_v0  ;;  %652 = vmatprep.subr.bf16.mxu1 %v3090_v22  ;;  %v3120_v0 = vcombine.high %v143_v35, %v147_v36  ;;  %v3574_v22 = vld [vmem:[#allocation7 + $0x68] ss:$16 sps:$4 sm:$0xff]   ;;  %v3601_v35 = vld [vmem:[#allocation7 + $0x100] ss:$16 sps:$4 sm:$0xff]   ;;  %v3609_v36 = vld [vmem:[#allocation7 + $0x124] ss:$16 sps:$4 sm:$0xff]  }
  0x84   :  { %612 = vmatpush1.bf16.msra.mxu0 %v3087_v16  ;;  %v3571_v16 = vld [vmem:[#allocation7 + $0x60] ss:$16 sps:$4 sm:$0xff]  }
  0x85   :  { %613 = vmatprep.subr.bf16.mxu0 %v3096_v18  ;;  %653 = vmatpush1.bf16.msra.mxu1 %v3089_v29  ;;  %v3568_v18 = vld [vmem:[#allocation7 + $0x48] ss:$16 sps:$4 sm:$0xff]  }
  0x86   :  { %654 = vmatprep.subr.bf16.mxu1 %v3098_v30  ;;  %v3586_v29 = vld [vmem:[#allocation7 + $0xa8] ss:$16 sps:$4 sm:$0xff]   ;;  %v3594_v30 = vld [vmem:[#allocation7 + $0xcc] ss:$16 sps:$4 sm:$0xff]  }
  0x88   :  { %614 = vmatpush1.bf16.msra.mxu0 %v3095_v24  ;;  %v3591_v24 = vld [vmem:[#allocation7 + $0xc4] ss:$16 sps:$4 sm:$0xff]  }
  0x89   :  { %615 = vmatprep.subr.bf16.mxu0 %v3104_v26  ;;  %655 = vmatpush1.bf16.msra.mxu1 %v3097_v37  ;;  %v3588_v26 = vld [vmem:[#allocation7 + $0xac] ss:$16 sps:$4 sm:$0xff]   ;;  %v3598_v37 = vld [vmem:[#allocation7 + $0xe8] ss:$16 sps:$4 sm:$0xff]  }
  0x8a   :  { %656 = vmatprep.subr.bf16.mxu1 %v3106_v38  ;;  %v3606_v38 = vld [vmem:[#allocation7 + $0x10c] ss:$16 sps:$4 sm:$0xff]  }
  0x8c   :  { %616 = vmatpush1.bf16.msra.mxu0 %v3103_v32  ;;  %v3603_v32 = vld [vmem:[#allocation7 + $0x104] ss:$16 sps:$4 sm:$0xff]  }
  0x8d   :  { %617 = vmatprep.subr.bf16.mxu0 %v3112_v34  ;;  %657 = vmatpush1.bf16.msra.mxu1 %v3105_v44  ;;  %v3600_v34 = vld [vmem:[#allocation7 + $0xec] ss:$16 sps:$4 sm:$0xff]   ;;  %v3610_v44 = vld [vmem:[#allocation7 + $0x128] ss:$16 sps:$4 sm:$0xff]  }
  0x8e   :  { %658 = vmatprep.subr.bf16.mxu1 %v3114_v45  ;;  %v3618_v45 = vld [vmem:[#allocation7 + $0x14c] ss:$16 sps:$4 sm:$0xff]  }
  0x90   :  { %618 = vmatpush1.bf16.msra.mxu0 %v3111_v40  ;;  %v3615_v40 = vld [vmem:[#allocation7 + $0x144] ss:$16 sps:$4 sm:$0xff]  }
  0x91   :  { %619 = vmatprep.subr.bf16.mxu0 %v3120_v0  ;;  %659 = vmatpush1.bf16.msra.mxu1 %v3113_v52  ;;  %v3612_v0 = vld [vmem:[#allocation7 + $0x12c] ss:$16 sps:$4 sm:$0xff]   ;;  %v3622_v52 = vld [vmem:[#allocation7 + $0x168] ss:$16 sps:$4 sm:$0xff]  }
  0x92   :  { %660 = vmatprep.subr.bf16.mxu1 %v3122_v53  ;;  %v3630_v53 = vld [vmem:[#allocation7 + $0x18c] ss:$16 sps:$4 sm:$0xff]  }
  0x94   :  { %620 = vmatpush1.bf16.msra.mxu0 %v3119_v47  ;;  %v3627_v47 = vld [vmem:[#allocation7 + $0x184] ss:$16 sps:$4 sm:$0xff]  }
  0x95   :  { %621 = vmatprep.subr.bf16.mxu0 %v3128_v49  ;;  %661 = vmatpush1.bf16.msra.mxu1 %v3121_v58  ;;  %v3624_v49 = vld [vmem:[#allocation7 + $0x16c] ss:$16 sps:$4 sm:$0xff]   ;;  %v3634_v58 = vld [vmem:[#allocation7 + $0x1a8] ss:$16 sps:$4 sm:$0xff]  }
  0x96   :  { %662 = vmatprep.subr.bf16.mxu1 %v3130_v61  ;;  %v3645_v61 = vld [vmem:[#allocation7 + $0x1e4] ss:$16 sps:$4 sm:$0xff]  }
  0x98   :  { %622 = vmatpush1.bf16.msra.mxu0 %v3127_v55  ;;  %v3631_v55 = vld [vmem:[#allocation7 + $0x1a0] ss:$16 sps:$4 sm:$0xff]  }
  0x99   :  { %623 = vmatprep.subr.bf16.mxu0 %v3136_v57  ;;  %663 = vmatpush1.bf16.msra.mxu1 %v3129_v1  ;;  %v3639_v57 = vld [vmem:[#allocation7 + $0x1c4] ss:$16 sps:$4 sm:$0xff]   ;;  %v3648_v1 = vld [vmem:[#allocation7 + $0x1ec] ss:$16 sps:$4 sm:$0xff]  }
  0x9a   :  { %664 = vmatprep.subr.bf16.mxu1 %v3138_v4  ;;  %v3646_v4 = vld [vmem:[#allocation7 + $0x1e8] ss:$16 sps:$4 sm:$0xff]  }
  0x9c   :  { %624 = vmatpush1.bf16.msra.mxu0 %v3135_v63  ;;  %v3643_v63 = vld [vmem:[#allocation7 + $0x1e0] ss:$16 sps:$4 sm:$0xff]  }
  0x9d   :  { %2265 = vmatprep.subr.bf16.mxu0 %v3555_v62  ;;  %665 = vmatpush1.bf16.msra.mxu1 %v3137_v7  ;;  %v3640_v62 = vld [vmem:[#allocation7 + $0x1c8] ss:$16 sps:$4 sm:$0xff]  }
  0x9e   :  { %2429 = vmatprep.subr.bf16.mxu1 %v3558_v6  ;;  %v167_v6 = vlaneseq }
  0x9f   :  { %642 = vmatmul.mubr.bf16.vlgmr.msra.gmra.mrb[4].mxu0 %v4257_v2 }
  0xa0   :  { %2266 = vmatpush1.bf16.msra.mxu0 %v3553_v3  ;;  %683 = vmatmul.mubr.bf16.vlgmr.msra.gmra.mrb[4].mxu1 %v4257_v2  ;;  %v3583_v2 = vld [vmem:[#allocation7 + $0xa0] ss:$16 sps:$4 sm:$0xff]   ;;  %v3651_v3 = vld [vmem:[#allocation7 + $0x204] ss:$16 sps:$4 sm:$0xff]   ;;  %v4265_v7 = vshrl.u32 %v167_v6, 7 }
  0xa1   :  { %2267 = vmatprep.subr.bf16.mxu0 %v3561_v5  ;;  %2430 = vmatpush1.bf16.msra.mxu1 %v3556_v10  ;;  %v3654_v5 = vld [vmem:[#allocation7 + $0x20c] ss:$16 sps:$4 sm:$0xff]  }
  0xa2   :  { %2431 = vmatprep.subr.bf16.mxu1 %v3564_v11  ;;  %v173_v10 = vsub.s32 1, %v4265_v7 }
  0xa4   :  { %2268 = vmatpush1.bf16.msra.mxu0 %v3559_v8  ;;  %v169_v8 = vsub.s32 0, %v4265_v7 }
  0xa5   :  { %2269 = vmatprep.subr.bf16.mxu0 %v3567_v9  ;;  %2432 = vmatpush1.bf16.msra.mxu1 %v3562_v14  ;;  %v4271_v9 = vld [vmem:[%s4345_s5] sm:$0xff]  ;;  %v181_v14 = vsub.s32 3, %v4265_v7 }
  0xa6   :  { %2433 = vmatprep.subr.bf16.mxu1 %v3570_v15  ;;  %v170_v11 = vrot.slane %v4271_v9, %v169_v8 }
  0xa8   :  { %2270 = vmatpush1.bf16.msra.mxu0 %v3565_v12  ;;  %v174_v12 = vrot.slane %v4271_v9, %v173_v10 }
  0xa9   :  { %2271 = vmatprep.subr.bf16.mxu0 %v3573_v13  ;;  %2434 = vmatpush1.bf16.msra.mxu1 %v3568_v18 }
  0xaa   :  { %2435 = vmatprep.subr.bf16.mxu1 %v3576_v19 }
  0xac   :  { %2272 = vmatpush1.bf16.msra.mxu0 %v3571_v16 }
  0xad   :  { %2273 = vmatprep.subr.bf16.mxu0 %v3579_v17  ;;  %2436 = vmatpush1.bf16.msra.mxu1 %v3574_v22  ;;  %v182_v22 = vrot.slane %v4271_v9, %v181_v14 }
  0xae   :  { %2437 = vmatprep.subr.bf16.mxu1 %v3582_v23 }
  0xb0   :  { %2274 = vmatpush1.bf16.msra.mxu0 %v3577_v20 }
  0xb1   :  { %2275 = vmatprep.subr.bf16.mxu0 %v3585_v21  ;;  %2438 = vmatpush1.bf16.msra.mxu1 %v3580_v25 }
  0xb2   :  { %2439 = vmatprep.subr.bf16.mxu1 %v3588_v26 }
  0xb4   :  { %2276 = vmatpush1.bf16.msra.mxu0 %v3583_v2  ;;  %v3649_v2 = vld [vmem:[#allocation7 + $0x200] ss:$16 sps:$4 sm:$0xff]  }
  0xb5   :  { %2277 = vmatprep.subr.bf16.mxu0 %v3591_v24  ;;  %2440 = vmatpush1.bf16.msra.mxu1 %v3586_v29  ;;  %v3652_v24 = vld [vmem:[#allocation7 + $0x208] ss:$16 sps:$4 sm:$0xff]  }
  0xb6   :  { %2441 = vmatprep.subr.bf16.mxu1 %v3594_v30 }
  0xb8   :  { %2278 = vmatpush1.bf16.msra.mxu0 %v3589_v27  ;;  %v3657_v27 = vld [vmem:[#allocation7 + $0x224] ss:$16 sps:$4 sm:$0xff]  }
  0xb9   :  { %2279 = vmatprep.subr.bf16.mxu0 %v3597_v28  ;;  %2442 = vmatpush1.bf16.msra.mxu1 %v3592_v33  ;;  %v3660_v28 = vld [vmem:[#allocation7 + $0x22c] ss:$16 sps:$4 sm:$0xff]   ;;  %v3655_v33 = vld [vmem:[#allocation7 + $0x220] ss:$16 sps:$4 sm:$0xff]  }
  0xba   :  { %2443 = vmatprep.subr.bf16.mxu1 %v3600_v34  ;;  %v3658_v34 = vld [vmem:[#allocation7 + $0x228] ss:$16 sps:$4 sm:$0xff]  }
  0xbc   :  { %2280 = vmatpush1.bf16.msra.mxu0 %v3595_v31 }
  0xbd   :  { %2281 = vmatprep.subr.bf16.mxu0 %v3603_v32  ;;  %2444 = vmatpush1.bf16.msra.mxu1 %v3598_v37  ;;  %v3666_v37 = vld [vmem:[#allocation7 + $0x24c] ss:$16 sps:$4 sm:$0xff]  }
  0xbe   :  { %2445 = vmatprep.subr.bf16.mxu1 %v3606_v38 }
  0xc0   :  { %2282 = vmatpush1.bf16.msra.mxu0 %v3601_v35 }
  0xc1   :  { %2283 = vmatprep.subr.bf16.mxu0 %v3609_v36  ;;  %2446 = vmatpush1.bf16.msra.mxu1 %v3604_v41  ;;  %v3663_v36 = vld [vmem:[#allocation7 + $0x244] ss:$16 sps:$4 sm:$0xff]  }
  0xc2   :  { %2447 = vmatprep.subr.bf16.mxu1 %v3612_v0  ;;  %v3669_v41 = vld [vmem:[#allocation7 + $0x264] ss:$16 sps:$4 sm:$0xff]   ;;  %v3672_v0 = vld [vmem:[#allocation7 + $0x26c] ss:$16 sps:$4 sm:$0xff]  }
  0xc4   :  { %2284 = vmatpush1.bf16.msra.mxu0 %v3607_v39  ;;  %v3661_v39 = vld [vmem:[#allocation7 + $0x240] ss:$16 sps:$4 sm:$0xff]  }
  0xc5   :  { %2285 = vmatprep.subr.bf16.mxu0 %v3615_v40  ;;  %2448 = vmatpush1.bf16.msra.mxu1 %v3610_v44  ;;  %v3664_v40 = vld [vmem:[#allocation7 + $0x248] ss:$16 sps:$4 sm:$0xff]   ;;  %v3675_v44 = vld [vmem:[#allocation7 + $0x284] ss:$16 sps:$4 sm:$0xff]  }
  0xc6   :  { %2449 = vmatprep.subr.bf16.mxu1 %v3618_v45  ;;  %v3678_v45 = vld [vmem:[#allocation7 + $0x28c] ss:$16 sps:$4 sm:$0xff]  }
  0xc8   :  { %2286 = vmatpush1.bf16.msra.mxu0 %v3613_v42  ;;  %v3667_v42 = vld [vmem:[#allocation7 + $0x260] ss:$16 sps:$4 sm:$0xff]  }
  0xc9   :  { %2287 = vmatprep.subr.bf16.mxu0 %v3621_v43  ;;  %2450 = vmatpush1.bf16.msra.mxu1 %v3616_v48  ;;  %v3670_v43 = vld [vmem:[#allocation7 + $0x268] ss:$16 sps:$4 sm:$0xff]   ;;  %v3681_v48 = vld [vmem:[#allocation7 + $0x2a4] ss:$16 sps:$4 sm:$0xff]  }
  0xca   :  { %2451 = vmatprep.subr.bf16.mxu1 %v3624_v49  ;;  %v3684_v49 = vld [vmem:[#allocation7 + $0x2ac] ss:$16 sps:$4 sm:$0xff]  }
  0xcc   :  { %2288 = vmatpush1.bf16.msra.mxu0 %v3619_v46  ;;  %v3673_v46 = vld [vmem:[#allocation7 + $0x280] ss:$16 sps:$4 sm:$0xff]  }
  0xcd   :  { %2289 = vmatprep.subr.bf16.mxu0 %v3627_v47  ;;  %2452 = vmatpush1.bf16.msra.mxu1 %v3622_v52  ;;  %v3676_v47 = vld [vmem:[#allocation7 + $0x288] ss:$16 sps:$4 sm:$0xff]   ;;  %v3687_v52 = vld [vmem:[#allocation7 + $0x2c4] ss:$16 sps:$4 sm:$0xff]  }
  0xce   :  { %2453 = vmatprep.subr.bf16.mxu1 %v3630_v53  ;;  %v3690_v53 = vld [vmem:[#allocation7 + $0x2cc] ss:$16 sps:$4 sm:$0xff]  }
  0xd0   :  { %2290 = vmatpush1.bf16.msra.mxu0 %v3625_v50  ;;  %v3679_v50 = vld [vmem:[#allocation7 + $0x2a0] ss:$16 sps:$4 sm:$0xff]  }
  0xd1   :  { %2291 = vmatprep.subr.bf16.mxu0 %v3633_v51  ;;  %2454 = vmatpush1.bf16.msra.mxu1 %v3628_v54  ;;  %v3682_v51 = vld [vmem:[#allocation7 + $0x2a8] ss:$16 sps:$4 sm:$0xff]   ;;  %v3685_v54 = vld [vmem:[#allocation7 + $0x2c0] ss:$16 sps:$4 sm:$0xff]  }
  0xd2   :  { %2455 = vmatprep.subr.bf16.mxu1 %v3636_v56  ;;  %v3693_v56 = vld [vmem:[#allocation7 + $0x2e4] ss:$16 sps:$4 sm:$0xff]  }
  0xd4   :  { %2292 = vmatpush1.bf16.msra.mxu0 %v3631_v55  ;;  %v3688_v55 = vld [vmem:[#allocation7 + $0x2c8] ss:$16 sps:$4 sm:$0xff]  }
  0xd5   :  { %2293 = vmatprep.subr.bf16.mxu0 %v3639_v57  ;;  %2456 = vmatpush1.bf16.msra.mxu1 %v3634_v58  ;;  %v3696_v57 = vld [vmem:[#allocation7 + $0x2ec] ss:$16 sps:$4 sm:$0xff]  }
  0xd6   :  { %2457 = vmatprep.subr.bf16.mxu1 %v3642_v60  ;;  %v3691_v60 = vld [vmem:[#allocation7 + $0x2e0] ss:$16 sps:$4 sm:$0xff]  }
  0xd8   :  { %2294 = vmatpush1.bf16.msra.mxu0 %v3637_v59 }
  0xd9   :  { %2295 = vmatprep.subr.bf16.mxu0 %v3645_v61  ;;  %2458 = vmatpush1.bf16.msra.mxu1 %v3640_v62  ;;  %v3694_v61 = vld [vmem:[#allocation7 + $0x2e8] ss:$16 sps:$4 sm:$0xff]  }
  0xda   :  { %2459 = vmatprep.subr.bf16.mxu1 %v3648_v1  ;;  %v3702_v1 = vld [vmem:[#allocation7 + $0x30c] ss:$16 sps:$4 sm:$0xff]  }
  0xdc   :  { %2296 = vmatpush1.bf16.msra.mxu0 %v3643_v63  ;;  %v3699_v63 = vld [vmem:[#allocation7 + $0x304] ss:$16 sps:$4 sm:$0xff]  }
  0xdd   :  { %2306 = vmatprep.subr.bf16.mxu0 %v3651_v3  ;;  %2460 = vmatpush1.bf16.msra.mxu1 %v3646_v4  ;;  %v3697_v4 = vld [vmem:[#allocation7 + $0x300] ss:$16 sps:$4 sm:$0xff]  }
  0xde   :  { %2470 = vmatprep.subr.bf16.mxu1 %v3654_v5  ;;  %v3700_v5 = vld [vmem:[#allocation7 + $0x308] ss:$16 sps:$4 sm:$0xff]  }
 0x152   :  { %v561_v13 = vpop.f32.mrb[0].mxu0  ;;  %v4284_v25 = vpop.f32.mrb[0].mxu1 }
 0x153   :  { %v562_v15 = vadd.f32 %v561_v13, %v170_v11  ;;  %v563_v16 = vpop.f32.mrb[1].mxu0  ;;  %v604_v29 = vpop.f32.mrb[1].mxu1  ;;  %v3705_v11 = vld [vmem:[#allocation7 + $0x324] ss:$16 sps:$4 sm:$0xff]  }
 0x154   :  { %v564_v17 = vadd.f32 %v563_v16, %v174_v12  ;;  %v565_v18 = vpop.f32.mrb[2].mxu0  ;;  %v605_v30 = vadd.f32 %v604_v29, %v182_v22  ;;  %v606_v31 = vpop.f32.mrb[2].mxu1  ;;  %v3708_v12 = vld [vmem:[#allocation7 + $0x32c] ss:$16 sps:$4 sm:$0xff]   ;;  %v3712_v22 = vld [vmem:[#allocation7 + $0x348] ss:$16 sps:$4 sm:$0xff]  }
 0x155   :  { %v691_v19 = vmax.f32 %v562_v15, 0.0  ;;  %v566_v20 = vpop.f32.mrb[3].mxu0  ;;  %v607_v32 = vpop.f32.mrb[3].mxu1  ;;  %v3706_v18 = vld [vmem:[#allocation7 + $0x328] ss:$16 sps:$4 sm:$0xff]   ;;  %v177_v29 = vsub.s32 2, %v4265_v7 }
 0x156   :  { %v692_v21 = vmax.f32 %v564_v17, 0.0  ;;  %v694_v35 = vmax.f32 %v605_v30, 0.0  ;;  %v3703_v17 = vld [vmem:[#allocation7 + $0x320] ss:$16 sps:$4 sm:$0xff]   ;;  %v3714_v20 = vld [vmem:[#allocation7 + $0x34c] ss:$16 sps:$4 sm:$0xff]  }
 0x157   :  { %v699_v26 = vpack.c.bf16 %v691_v19, %v691_v19  ;;  %v3711_v19 = vld [vmem:[#allocation7 + $0x344] ss:$16 sps:$4 sm:$0xff]   ;;  %v3721_v30 = vld [vmem:[#allocation7 + $0x380] ss:$16 sps:$4 sm:$0xff]   ;;  %v3724_v31 = vld [vmem:[#allocation7 + $0x388] ss:$16 sps:$4 sm:$0xff]  }
 0x158   :  { %v700_v23 = vpack.c.bf16 %v692_v21, %v692_v21  ;;  %v702_v38 = vpack.c.bf16 %v694_v35, %v694_v35  ;;  %v3709_v21 = vld [vmem:[#allocation7 + $0x340] ss:$16 sps:$4 sm:$0xff]   ;;  %v3729_v32 = vld [vmem:[#allocation7 + $0x3a4] ss:$16 sps:$4 sm:$0xff]   ;;  %v178_v35 = vrot.slane %v4271_v9, %v177_v29 }
 0x15a   :  { %2297 = vmatprep.mubr.bf16.mxu0 %v700_v23  ;;  %2461 = vmatprep.mubr.bf16.mxu1 %v700_v23  ;;  %v3717_v23 = vld [vmem:[#allocation7 + $0x364] ss:$16 sps:$4 sm:$0xff]  }
 0x15b   :  { %2298 = vmatmul.mubr.bf16.vlgmr.msra.gmra.mrb[8].mxu0 %v699_v26  ;;  %2462 = vmatmul.mubr.bf16.vlgmr.msra.gmra.mrb[8].mxu1 %v699_v26  ;;  %v3718_v26 = vld [vmem:[#allocation7 + $0x368] ss:$16 sps:$4 sm:$0xff]  }
 0x15c   :  { %2307 = vmatpush1.bf16.msra.mxu0 %v3649_v2  ;;  %2471 = vmatpush1.bf16.msra.mxu1 %v3652_v24  ;;  %v3720_v2 = vld [vmem:[#allocation7 + $0x36c] ss:$16 sps:$4 sm:$0xff]   ;;  %v3715_v24 = vld [vmem:[#allocation7 + $0x360] ss:$16 sps:$4 sm:$0xff]  }
 0x15d   :  { %2308 = vmatprep.subr.bf16.mxu0 %v3657_v27  ;;  %2472 = vmatprep.subr.bf16.mxu1 %v3660_v28  ;;  %v3723_v27 = vld [vmem:[#allocation7 + $0x384] ss:$16 sps:$4 sm:$0xff]   ;;  %v3726_v28 = vld [vmem:[#allocation7 + $0x38c] ss:$16 sps:$4 sm:$0xff]  }
 0x15e   :  { %2338 = vmatprep.mubr.bf16.mxu0 %v702_v38  ;;  %2502 = vmatprep.mubr.bf16.mxu1 %v702_v38  ;;  %v3735_v38 = vld [vmem:[#allocation7 + $0x3c4] ss:$16 sps:$4 sm:$0xff]  }
 0x160   :  { %2309 = vmatpush1.bf16.msra.mxu0 %v3655_v33  ;;  %2473 = vmatpush1.bf16.msra.mxu1 %v3658_v34  ;;  %v3732_v33 = vld [vmem:[#allocation7 + $0x3ac] ss:$16 sps:$4 sm:$0xff]   ;;  %v189_v34 = vsub.s32 5, %v4265_v7 }
 0x161   :  { %2310 = vmatprep.subr.bf16.mxu0 %v3663_v36  ;;  %2474 = vmatprep.subr.bf16.mxu1 %v3666_v37  ;;  %v3727_v36 = vld [vmem:[#allocation7 + $0x3a0] ss:$16 sps:$4 sm:$0xff]   ;;  %v3730_v37 = vld [vmem:[#allocation7 + $0x3a8] ss:$16 sps:$4 sm:$0xff]  }
 0x164   :  { %2311 = vmatpush1.bf16.msra.mxu0 %v3661_v39  ;;  %2475 = vmatpush1.bf16.msra.mxu1 %v3664_v40  ;;  %v3738_v39 = vld [vmem:[#allocation7 + $0x3cc] ss:$16 sps:$4 sm:$0xff]   ;;  %v190_v40 = vrot.slane %v4271_v9, %v189_v34  ;;  %v3801_v34 = vld [vmem:[#allocation7 + $0x524] ss:$16 sps:$4 sm:$0xff]  }
 0x165   :  { %2312 = vmatprep.subr.bf16.mxu0 %v3669_v41  ;;  %2476 = vmatprep.subr.bf16.mxu1 %v3672_v0  ;;  %v603_v41 = vadd.f32 %v4284_v25, %v178_v35  ;;  %v3733_v0 = vld [vmem:[#allocation7 + $0x3c0] ss:$16 sps:$4 sm:$0xff]   ;;  %v3804_v35 = vld [vmem:[#allocation7 + $0x52c] ss:$16 sps:$4 sm:$0xff]  }
 0x168   :  { %2313 = vmatpush1.bf16.msra.mxu0 %v3667_v42  ;;  %2477 = vmatpush1.bf16.msra.mxu1 %v3670_v43  ;;  %v3736_v42 = vld [vmem:[#allocation7 + $0x3c8] ss:$16 sps:$4 sm:$0xff]   ;;  %v3741_v43 = vld [vmem:[#allocation7 + $0x3e4] ss:$16 sps:$4 sm:$0xff]  }
 0x169   :  { %2314 = vmatprep.subr.bf16.mxu0 %v3675_v44  ;;  %2478 = vmatprep.subr.bf16.mxu1 %v3678_v45  ;;  %v3744_v44 = vld [vmem:[#allocation7 + $0x3ec] ss:$16 sps:$4 sm:$0xff]  }
 0x16c   :  { %2315 = vmatpush1.bf16.msra.mxu0 %v3673_v46  ;;  %2479 = vmatpush1.bf16.msra.mxu1 %v3676_v47  ;;  %v693_v46 = vmax.f32 %v603_v41, 0.0  ;;  %v3739_v47 = vld [vmem:[#allocation7 + $0x3e0] ss:$16 sps:$4 sm:$0xff]   ;;  %v3808_v41 = vld [vmem:[#allocation7 + $0x548] ss:$16 sps:$4 sm:$0xff]  }
 0x16d   :  { %2316 = vmatprep.subr.bf16.mxu0 %v3681_v48  ;;  %2480 = vmatprep.subr.bf16.mxu1 %v3684_v49  ;;  %v3742_v48 = vld [vmem:[#allocation7 + $0x3e8] ss:$16 sps:$4 sm:$0xff]   ;;  %v3747_v49 = vld [vmem:[#allocation7 + $0x404] ss:$16 sps:$4 sm:$0xff]  }
 0x170   :  { %2317 = vmatpush1.bf16.msra.mxu0 %v3679_v50  ;;  %2481 = vmatpush1.bf16.msra.mxu1 %v3682_v51  ;;  %v3750_v50 = vld [vmem:[#allocation7 + $0x40c] ss:$16 sps:$4 sm:$0xff]   ;;  %v701_v51 = vpack.c.bf16 %v693_v46, %v693_v46 }
 0x171   :  { %2318 = vmatprep.subr.bf16.mxu0 %v3687_v52  ;;  %2482 = vmatprep.subr.bf16.mxu1 %v3690_v53  ;;  %v3745_v52 = vld [vmem:[#allocation7 + $0x400] ss:$16 sps:$4 sm:$0xff]   ;;  %v3748_v53 = vld [vmem:[#allocation7 + $0x408] ss:$16 sps:$4 sm:$0xff]   ;;  %v3822_v46 = vld [vmem:[#allocation7 + $0x58c] ss:$16 sps:$4 sm:$0xff]  }
 0x172   :  { %v4286_v58 = vpop.f32.mrb[4].mxu0 }
 0x173   :  { %v4288_v59 = vpop.f32.mrb[5].mxu0  ;;  %v4290_v6 = vpop.f32.mrb[4].mxu1 }
 0x174   :  { %2319 = vmatpush1.bf16.msra.mxu0 %v3685_v54  ;;  %2483 = vmatpush1.bf16.msra.mxu1 %v3688_v55  ;;  %v647_v62 = vpop.f32.mrb[6].mxu0  ;;  %v4292_v13 = vpop.f32.mrb[5].mxu1  ;;  %v646_v45 = vadd.f32 %v4288_v59, %v190_v40  ;;  %v3753_v54 = vld [vmem:[#allocation7 + $0x424] ss:$16 sps:$4 sm:$0xff]   ;;  %v3756_v55 = vld [vmem:[#allocation7 + $0x42c] ss:$16 sps:$4 sm:$0xff]  }
 0x175   :  { %2320 = vmatprep.subr.bf16.mxu0 %v3693_v56  ;;  %2484 = vmatprep.subr.bf16.mxu1 %v3696_v57  ;;  %v648_v3 = vpop.f32.mrb[7].mxu0  ;;  %v688_v15 = vpop.f32.mrb[6].mxu1  ;;  %v3751_v57 = vld [vmem:[#allocation7 + $0x420] ss:$16 sps:$4 sm:$0xff]   ;;  %v3754_v59 = vld [vmem:[#allocation7 + $0x428] ss:$16 sps:$4 sm:$0xff]  }
 0x176   :  { %v689_v16 = vpop.f32.mrb[7].mxu1  ;;  %v696_v25 = vmax.f32 %v646_v45, 0.0  ;;  %v3757_v62 = vld [vmem:[#allocation7 + $0x440] ss:$16 sps:$4 sm:$0xff]   ;;  %v3768_v3 = vld [vmem:[#allocation7 + $0x46c] ss:$16 sps:$4 sm:$0xff]  }
 0x177   :  { %v3769_v15 = vld [vmem:[#allocation7 + $0x480] ss:$16 sps:$4 sm:$0xff]   ;;  %v3772_v16 = vld [vmem:[#allocation7 + $0x488] ss:$16 sps:$4 sm:$0xff]   ;;  %v3819_v45 = vld [vmem:[#allocation7 + $0x584] ss:$16 sps:$4 sm:$0xff]  }
 0x178   :  { %2321 = vmatpush1.bf16.msra.mxu0 %v3691_v60  ;;  %2485 = vmatpush1.bf16.msra.mxu1 %v3694_v61  ;;  %v704_v56 = vpack.c.bf16 %v696_v25, %v696_v25  ;;  %v3759_v60 = vld [vmem:[#allocation7 + $0x444] ss:$16 sps:$4 sm:$0xff]   ;;  %v3762_v61 = vld [vmem:[#allocation7 + $0x44c] ss:$16 sps:$4 sm:$0xff]   ;;  %v3805_v40 = vld [vmem:[#allocation7 + $0x540] ss:$16 sps:$4 sm:$0xff]  }
 0x179   :  { %2322 = vmatprep.subr.bf16.mxu0 %v3699_v63  ;;  %2486 = vmatprep.subr.bf16.mxu1 %v3702_v1  ;;  %v3760_v63 = vld [vmem:[#allocation7 + $0x448] ss:$16 sps:$4 sm:$0xff]   ;;  %v3765_v1 = vld [vmem:[#allocation7 + $0x464] ss:$16 sps:$4 sm:$0xff]   ;;  %v3828_v25 = vld [vmem:[#allocation7 + $0x5ac] ss:$16 sps:$4 sm:$0xff]  }
 0x17c   :  { %2323 = vmatpush1.bf16.msra.mxu0 %v3697_v4  ;;  %2487 = vmatpush1.bf16.msra.mxu1 %v3700_v5  ;;  %v3763_v4 = vld [vmem:[#allocation7 + $0x460] ss:$16 sps:$4 sm:$0xff]   ;;  %v3766_v5 = vld [vmem:[#allocation7 + $0x468] ss:$16 sps:$4 sm:$0xff]  }
 0x17d   :  { %2324 = vmatprep.subr.bf16.mxu0 %v3705_v11  ;;  %2488 = vmatprep.subr.bf16.mxu1 %v3708_v12  ;;  %v3771_v11 = vld [vmem:[#allocation7 + $0x484] ss:$16 sps:$4 sm:$0xff]   ;;  %v3774_v12 = vld [vmem:[#allocation7 + $0x48c] ss:$16 sps:$4 sm:$0xff]  }
 0x180   :  { %2325 = vmatpush1.bf16.msra.mxu0 %v3703_v17  ;;  %2489 = vmatpush1.bf16.msra.mxu1 %v3706_v18  ;;  %v3777_v17 = vld [vmem:[#allocation7 + $0x4a4] ss:$16 sps:$4 sm:$0xff]   ;;  %v3780_v18 = vld [vmem:[#allocation7 + $0x4ac] ss:$16 sps:$4 sm:$0xff]  }
 0x181   :  { %2326 = vmatprep.subr.bf16.mxu0 %v3711_v19  ;;  %2490 = vmatprep.subr.bf16.mxu1 %v3714_v20  ;;  %v3775_v19 = vld [vmem:[#allocation7 + $0x4a0] ss:$16 sps:$4 sm:$0xff]   ;;  %v3778_v20 = vld [vmem:[#allocation7 + $0x4a8] ss:$16 sps:$4 sm:$0xff]  }
 0x184   :  { %2327 = vmatpush1.bf16.msra.mxu0 %v3709_v21  ;;  %2491 = vmatpush1.bf16.msra.mxu1 %v3712_v22  ;;  %v3783_v21 = vld [vmem:[#allocation7 + $0x4c4] ss:$16 sps:$4 sm:$0xff]   ;;  %v3786_v22 = vld [vmem:[#allocation7 + $0x4cc] ss:$16 sps:$4 sm:$0xff]  }
 0x185   :  { %2328 = vmatprep.subr.bf16.mxu0 %v3717_v23  ;;  %2492 = vmatprep.subr.bf16.mxu1 %v3720_v2  ;;  %v3781_v23 = vld [vmem:[#allocation7 + $0x4c0] ss:$16 sps:$4 sm:$0xff]   ;;  %v3784_v2 = vld [vmem:[#allocation7 + $0x4c8] ss:$16 sps:$4 sm:$0xff]  }
 0x188   :  { %2329 = vmatpush1.bf16.msra.mxu0 %v3715_v24  ;;  %2493 = vmatpush1.bf16.msra.mxu1 %v3718_v26  ;;  %v3789_v24 = vld [vmem:[#allocation7 + $0x4e4] ss:$16 sps:$4 sm:$0xff]   ;;  %v3792_v26 = vld [vmem:[#allocation7 + $0x4ec] ss:$16 sps:$4 sm:$0xff]  }
 0x189   :  { %2330 = vmatprep.subr.bf16.mxu0 %v3723_v27  ;;  %2494 = vmatprep.subr.bf16.mxu1 %v3726_v28  ;;  %v3787_v27 = vld [vmem:[#allocation7 + $0x4e0] ss:$16 sps:$4 sm:$0xff]   ;;  %v3790_v28 = vld [vmem:[#allocation7 + $0x4e8] ss:$16 sps:$4 sm:$0xff]  }
 0x18c   :  { %2331 = vmatpush1.bf16.msra.mxu0 %v3721_v30  ;;  %2495 = vmatpush1.bf16.msra.mxu1 %v3724_v31  ;;  %v3795_v30 = vld [vmem:[#allocation7 + $0x504] ss:$16 sps:$4 sm:$0xff]   ;;  %v3798_v31 = vld [vmem:[#allocation7 + $0x50c] ss:$16 sps:$4 sm:$0xff]  }
 0x18d   :  { %2332 = vmatprep.subr.bf16.mxu0 %v3729_v32  ;;  %2496 = vmatprep.subr.bf16.mxu1 %v3732_v33  ;;  %v3793_v32 = vld [vmem:[#allocation7 + $0x500] ss:$16 sps:$4 sm:$0xff]   ;;  %v3796_v33 = vld [vmem:[#allocation7 + $0x508] ss:$16 sps:$4 sm:$0xff]  }
 0x190   :  { %2333 = vmatpush1.bf16.msra.mxu0 %v3727_v36  ;;  %2497 = vmatpush1.bf16.msra.mxu1 %v3730_v37  ;;  %v3799_v36 = vld [vmem:[#allocation7 + $0x520] ss:$16 sps:$4 sm:$0xff]   ;;  %v3802_v37 = vld [vmem:[#allocation7 + $0x528] ss:$16 sps:$4 sm:$0xff]  }
 0x191   :  { %2334 = vmatprep.subr.bf16.mxu0 %v3735_v38  ;;  %2498 = vmatprep.subr.bf16.mxu1 %v3738_v39  ;;  %v3807_v38 = vld [vmem:[#allocation7 + $0x544] ss:$16 sps:$4 sm:$0xff]   ;;  %v3810_v39 = vld [vmem:[#allocation7 + $0x54c] ss:$16 sps:$4 sm:$0xff]  }
 0x194   :  { %2335 = vmatpush1.bf16.msra.mxu0 %v3733_v0  ;;  %2499 = vmatpush1.bf16.msra.mxu1 %v3736_v42  ;;  %v3813_v0 = vld [vmem:[#allocation7 + $0x564] ss:$16 sps:$4 sm:$0xff]   ;;  %v3816_v42 = vld [vmem:[#allocation7 + $0x56c] ss:$16 sps:$4 sm:$0xff]  }
 0x195   :  { %2336 = vmatprep.subr.bf16.mxu0 %v3741_v43  ;;  %2500 = vmatprep.subr.bf16.mxu1 %v3744_v44  ;;  %v3811_v43 = vld [vmem:[#allocation7 + $0x560] ss:$16 sps:$4 sm:$0xff]   ;;  %v3814_v44 = vld [vmem:[#allocation7 + $0x568] ss:$16 sps:$4 sm:$0xff]  }
 0x198   :  { %2337 = vmatpush1.bf16.msra.mxu0 %v3739_v47  ;;  %2501 = vmatpush1.bf16.msra.mxu1 %v3742_v48  ;;  %v185_v47 = vsub.s32 4, %v4265_v7  ;;  %v3817_v48 = vld [vmem:[#allocation7 + $0x580] ss:$16 sps:$4 sm:$0xff]  }
 0x199   :  { %2347 = vmatprep.subr.bf16.mxu0 %v3747_v49  ;;  %2511 = vmatprep.subr.bf16.mxu1 %v3750_v50  ;;  %v3820_v49 = vld [vmem:[#allocation7 + $0x588] ss:$16 sps:$4 sm:$0xff]   ;;  %v3825_v50 = vld [vmem:[#allocation7 + $0x5a4] ss:$16 sps:$4 sm:$0xff]  }
 0x19b   :  { %2339 = vmatmul.mubr.bf16.vlgmr.msra.gmra.mrb[8].mxu0 %v701_v51  ;;  %2503 = vmatmul.mubr.bf16.vlgmr.msra.gmra.mrb[8].mxu1 %v701_v51  ;;  %v197_v51 = vsub.s32 7, %v4265_v7 }
 0x19c   :  { %2348 = vmatpush1.bf16.msra.mxu0 %v3745_v52  ;;  %2512 = vmatpush1.bf16.msra.mxu1 %v3748_v53  ;;  %v186_v52 = vrot.slane %v4271_v9, %v185_v47  ;;  %v3823_v53 = vld [vmem:[#allocation7 + $0x5a0] ss:$16 sps:$4 sm:$0xff]   ;;  %v3894_v47 = vld [vmem:[#allocation7 + $0x70c] ss:$16 sps:$4 sm:$0xff]  }
 0x19d   :  { %2349 = vmatprep.subr.bf16.mxu0 %v3753_v54  ;;  %2513 = vmatprep.subr.bf16.mxu1 %v3756_v55  ;;  %v3826_v54 = vld [vmem:[#allocation7 + $0x5a8] ss:$16 sps:$4 sm:$0xff]   ;;  %v3831_v55 = vld [vmem:[#allocation7 + $0x5c4] ss:$16 sps:$4 sm:$0xff]  }
 0x19e   :  { %2379 = vmatprep.mubr.bf16.mxu0 %v704_v56  ;;  %2543 = vmatprep.mubr.bf16.mxu1 %v704_v56  ;;  %v3834_v56 = vld [vmem:[#allocation7 + $0x5cc] ss:$16 sps:$4 sm:$0xff]  }
 0x1a0   :  { %2350 = vmatpush1.bf16.msra.mxu0 %v3751_v57  ;;  %2514 = vmatpush1.bf16.msra.mxu1 %v3754_v59  ;;  %v198_v57 = vrot.slane %v4271_v9, %v197_v51  ;;  %v644_v59 = vadd.f32 %v4286_v58, %v186_v52  ;;  %v3895_v51 = vld [vmem:[#allocation7 + $0x720] ss:$16 sps:$4 sm:$0xff]   ;;  %v3898_v52 = vld [vmem:[#allocation7 + $0x728] ss:$16 sps:$4 sm:$0xff]  }
 0x1a1   :  { %2351 = vmatprep.subr.bf16.mxu0 %v3759_v60  ;;  %2515 = vmatprep.subr.bf16.mxu1 %v3762_v61  ;;  %v3829_v60 = vld [vmem:[#allocation7 + $0x5c0] ss:$16 sps:$4 sm:$0xff]   ;;  %v3832_v61 = vld [vmem:[#allocation7 + $0x5c8] ss:$16 sps:$4 sm:$0xff]  }
 0x1a4   :  { %2352 = vmatpush1.bf16.msra.mxu0 %v3757_v62  ;;  %2516 = vmatpush1.bf16.msra.mxu1 %v3760_v63  ;;  %v3837_v62 = vld [vmem:[#allocation7 + $0x5e4] ss:$16 sps:$4 sm:$0xff]   ;;  %v3840_v63 = vld [vmem:[#allocation7 + $0x5ec] ss:$16 sps:$4 sm:$0xff]  }
 0x1a5   :  { %2353 = vmatprep.subr.bf16.mxu0 %v3765_v1  ;;  %2517 = vmatprep.subr.bf16.mxu1 %v3768_v3  ;;  %v687_v1 = vadd.f32 %v4292_v13, %v198_v57  ;;  %v695_v3 = vmax.f32 %v644_v59, 0.0  ;;  %v3909_v57 = vld [vmem:[#allocation7 + $0x764] ss:$16 sps:$4 sm:$0xff]   ;;  %v3912_v59 = vld [vmem:[#allocation7 + $0x76c] ss:$16 sps:$4 sm:$0xff]  }
 0x1a7   :  { %v698_v58 = vmax.f32 %v687_v1, 0.0  ;;  %v3913_v1 = vld [vmem:[#allocation7 + $0x780] ss:$16 sps:$4 sm:$0xff]  }
 0x1a8   :  { %2354 = vmatpush1.bf16.msra.mxu0 %v3763_v4  ;;  %2518 = vmatpush1.bf16.msra.mxu1 %v3766_v5  ;;  %v3835_v4 = vld [vmem:[#allocation7 + $0x5e0] ss:$16 sps:$4 sm:$0xff]   ;;  %v3838_v5 = vld [vmem:[#allocation7 + $0x5e8] ss:$16 sps:$4 sm:$0xff]  }
 0x1a9   :  { %2355 = vmatprep.subr.bf16.mxu0 %v3771_v11  ;;  %2519 = vmatprep.subr.bf16.mxu1 %v3774_v12  ;;  %v3843_v11 = vld [vmem:[#allocation7 + $0x604] ss:$16 sps:$4 sm:$0xff]   ;;  %v3846_v12 = vld [vmem:[#allocation7 + $0x60c] ss:$16 sps:$4 sm:$0xff]   ;;  %v706_v13 = vpack.c.bf16 %v698_v58, %v698_v58  ;;  %v3922_v58 = vld [vmem:[#allocation7 + $0x7a8] ss:$16 sps:$4 sm:$0xff]  }
 0x1ac   :  { %2356 = vmatpush1.bf16.msra.mxu0 %v3769_v15  ;;  %2520 = vmatpush1.bf16.msra.mxu1 %v3772_v16  ;;  %v703_v15 = vpack.c.bf16 %v695_v3, %v695_v3  ;;  %v3841_v16 = vld [vmem:[#allocation7 + $0x600] ss:$16 sps:$4 sm:$0xff]   ;;  %v3916_v3 = vld [vmem:[#allocation7 + $0x788] ss:$16 sps:$4 sm:$0xff]  }
 0x1ad   :  { %2357 = vmatprep.subr.bf16.mxu0 %v3777_v17  ;;  %2521 = vmatprep.subr.bf16.mxu1 %v3780_v18  ;;  %v3844_v17 = vld [vmem:[#allocation7 + $0x608] ss:$16 sps:$4 sm:$0xff]   ;;  %v3849_v18 = vld [vmem:[#allocation7 + $0x624] ss:$16 sps:$4 sm:$0xff]  }
 0x1b0   :  { %2358 = vmatpush1.bf16.msra.mxu0 %v3775_v19  ;;  %2522 = vmatpush1.bf16.msra.mxu1 %v3778_v20  ;;  %v3852_v19 = vld [vmem:[#allocation7 + $0x62c] ss:$16 sps:$4 sm:$0xff]   ;;  %v3847_v20 = vld [vmem:[#allocation7 + $0x620] ss:$16 sps:$4 sm:$0xff]  }
 0x1b1   :  { %2359 = vmatprep.subr.bf16.mxu0 %v3783_v21  ;;  %2523 = vmatprep.subr.bf16.mxu1 %v3786_v22  ;;  %v3850_v21 = vld [vmem:[#allocation7 + $0x628] ss:$16 sps:$4 sm:$0xff]   ;;  %v3855_v22 = vld [vmem:[#allocation7 + $0x644] ss:$16 sps:$4 sm:$0xff]  }
 0x1b4   :  { %2360 = vmatpush1.bf16.msra.mxu0 %v3781_v23  ;;  %2524 = vmatpush1.bf16.msra.mxu1 %v3784_v2  ;;  %v3858_v23 = vld [vmem:[#allocation7 + $0x64c] ss:$16 sps:$4 sm:$0xff]   ;;  %v3853_v2 = vld [vmem:[#allocation7 + $0x640] ss:$16 sps:$4 sm:$0xff]  }
 0x1b5   :  { %2361 = vmatprep.subr.bf16.mxu0 %v3789_v24  ;;  %2525 = vmatprep.subr.bf16.mxu1 %v3792_v26  ;;  %v3856_v24 = vld [vmem:[#allocation7 + $0x648] ss:$16 sps:$4 sm:$0xff]   ;;  %v3861_v26 = vld [vmem:[#allocation7 + $0x664] ss:$16 sps:$4 sm:$0xff]  }
 0x1b8   :  { %2362 = vmatpush1.bf16.msra.mxu0 %v3787_v27  ;;  %2526 = vmatpush1.bf16.msra.mxu1 %v3790_v28  ;;  %v3864_v27 = vld [vmem:[#allocation7 + $0x66c] ss:$16 sps:$4 sm:$0xff]   ;;  %v3859_v28 = vld [vmem:[#allocation7 + $0x660] ss:$16 sps:$4 sm:$0xff]  }
 0x1b9   :  { %2363 = vmatprep.subr.bf16.mxu0 %v3795_v30  ;;  %2527 = vmatprep.subr.bf16.mxu1 %v3798_v31  ;;  %v3862_v30 = vld [vmem:[#allocation7 + $0x668] ss:$16 sps:$4 sm:$0xff]   ;;  %v3867_v31 = vld [vmem:[#allocation7 + $0x684] ss:$16 sps:$4 sm:$0xff]  }
 0x1bc   :  { %2364 = vmatpush1.bf16.msra.mxu0 %v3793_v32  ;;  %2528 = vmatpush1.bf16.msra.mxu1 %v3796_v33  ;;  %v3870_v32 = vld [vmem:[#allocation7 + $0x68c] ss:$16 sps:$4 sm:$0xff]   ;;  %v3865_v33 = vld [vmem:[#allocation7 + $0x680] ss:$16 sps:$4 sm:$0xff]  }
 0x1bd   :  { %2365 = vmatprep.subr.bf16.mxu0 %v3801_v34  ;;  %2529 = vmatprep.subr.bf16.mxu1 %v3804_v35  ;;  %v3868_v34 = vld [vmem:[#allocation7 + $0x688] ss:$16 sps:$4 sm:$0xff]   ;;  %v3873_v35 = vld [vmem:[#allocation7 + $0x6a4] ss:$16 sps:$4 sm:$0xff]  }
 0x1c0   :  { %2366 = vmatpush1.bf16.msra.mxu0 %v3799_v36  ;;  %2530 = vmatpush1.bf16.msra.mxu1 %v3802_v37  ;;  %v3876_v36 = vld [vmem:[#allocation7 + $0x6ac] ss:$16 sps:$4 sm:$0xff]   ;;  %v3871_v37 = vld [vmem:[#allocation7 + $0x6a0] ss:$16 sps:$4 sm:$0xff]  }
 0x1c1   :  { %2367 = vmatprep.subr.bf16.mxu0 %v3807_v38  ;;  %2531 = vmatprep.subr.bf16.mxu1 %v3810_v39  ;;  %v3874_v38 = vld [vmem:[#allocation7 + $0x6a8] ss:$16 sps:$4 sm:$0xff]   ;;  %v3879_v39 = vld [vmem:[#allocation7 + $0x6c4] ss:$16 sps:$4 sm:$0xff]  }
 0x1c4   :  { %2368 = vmatpush1.bf16.msra.mxu0 %v3805_v40  ;;  %2532 = vmatpush1.bf16.msra.mxu1 %v3808_v41  ;;  %v3882_v40 = vld [vmem:[#allocation7 + $0x6cc] ss:$16 sps:$4 sm:$0xff]   ;;  %v3877_v41 = vld [vmem:[#allocation7 + $0x6c0] ss:$16 sps:$4 sm:$0xff]  }
 0x1c5   :  { %2369 = vmatprep.subr.bf16.mxu0 %v3813_v0  ;;  %2533 = vmatprep.subr.bf16.mxu1 %v3816_v42  ;;  %v3880_v0 = vld [vmem:[#allocation7 + $0x6c8] ss:$16 sps:$4 sm:$0xff]   ;;  %v3885_v42 = vld [vmem:[#allocation7 + $0x6e4] ss:$16 sps:$4 sm:$0xff]  }
 0x1c8   :  { %2370 = vmatpush1.bf16.msra.mxu0 %v3811_v43  ;;  %2534 = vmatpush1.bf16.msra.mxu1 %v3814_v44  ;;  %v3888_v43 = vld [vmem:[#allocation7 + $0x6ec] ss:$16 sps:$4 sm:$0xff]   ;;  %v3883_v44 = vld [vmem:[#allocation7 + $0x6e0] ss:$16 sps:$4 sm:$0xff]  }
 0x1c9   :  { %2371 = vmatprep.subr.bf16.mxu0 %v3819_v45  ;;  %2535 = vmatprep.subr.bf16.mxu1 %v3822_v46  ;;  %v3886_v45 = vld [vmem:[#allocation7 + $0x6e8] ss:$16 sps:$4 sm:$0xff]   ;;  %v3891_v46 = vld [vmem:[#allocation7 + $0x704] ss:$16 sps:$4 sm:$0xff]  }
 0x1cc   :  { %2372 = vmatpush1.bf16.msra.mxu0 %v3817_v48  ;;  %2536 = vmatpush1.bf16.msra.mxu1 %v3820_v49  ;;  %v3889_v48 = vld [vmem:[#allocation7 + $0x700] ss:$16 sps:$4 sm:$0xff]   ;;  %v3892_v49 = vld [vmem:[#allocation7 + $0x708] ss:$16 sps:$4 sm:$0xff]  }
 0x1cd   :  { %2373 = vmatprep.subr.bf16.mxu0 %v3825_v50  ;;  %2537 = vmatprep.subr.bf16.mxu1 %v3828_v25  ;;  %v3897_v50 = vld [vmem:[#allocation7 + $0x724] ss:$16 sps:$4 sm:$0xff]   ;;  %v3900_v25 = vld [vmem:[#allocation7 + $0x72c] ss:$16 sps:$4 sm:$0xff]  }
 0x1d0   :  { %2374 = vmatpush1.bf16.msra.mxu0 %v3823_v53  ;;  %2538 = vmatpush1.bf16.msra.mxu1 %v3826_v54  ;;  %v3903_v53 = vld [vmem:[#allocation7 + $0x744] ss:$16 sps:$4 sm:$0xff]   ;;  %v3906_v54 = vld [vmem:[#allocation7 + $0x74c] ss:$16 sps:$4 sm:$0xff]  }
 0x1d1   :  { %2375 = vmatprep.subr.bf16.mxu0 %v3831_v55  ;;  %2539 = vmatprep.subr.bf16.mxu1 %v3834_v56  ;;  %v3901_v55 = vld [vmem:[#allocation7 + $0x740] ss:$16 sps:$4 sm:$0xff]   ;;  %v3904_v56 = vld [vmem:[#allocation7 + $0x748] ss:$16 sps:$4 sm:$0xff]  }
 0x1d4   :  { %2376 = vmatpush1.bf16.msra.mxu0 %v3829_v60  ;;  %2540 = vmatpush1.bf16.msra.mxu1 %v3832_v61  ;;  %v3907_v60 = vld [vmem:[#allocation7 + $0x760] ss:$16 sps:$4 sm:$0xff]   ;;  %v3910_v61 = vld [vmem:[#allocation7 + $0x768] ss:$16 sps:$4 sm:$0xff]  }
 0x1d5   :  { %2377 = vmatprep.subr.bf16.mxu0 %v3837_v62  ;;  %2541 = vmatprep.subr.bf16.mxu1 %v3840_v63  ;;  %v3915_v62 = vld [vmem:[#allocation7 + $0x784] ss:$16 sps:$4 sm:$0xff]   ;;  %v3918_v63 = vld [vmem:[#allocation7 + $0x78c] ss:$16 sps:$4 sm:$0xff]  }
 0x1d8   :  { %2378 = vmatpush1.bf16.msra.mxu0 %v3835_v4  ;;  %2542 = vmatpush1.bf16.msra.mxu1 %v3838_v5  ;;  %v193_v4 = vsub.s32 6, %v4265_v7  ;;  %v3921_v5 = vld [vmem:[#allocation7 + $0x7a4] ss:$16 sps:$4 sm:$0xff]  }
 0x1d9   :  { %2388 = vmatprep.subr.bf16.mxu0 %v3843_v11  ;;  %2552 = vmatprep.subr.bf16.mxu1 %v3846_v12  ;;  %v3924_v11 = vld [vmem:[#allocation7 + $0x7ac] ss:$16 sps:$4 sm:$0xff]   ;;  %v3919_v12 = vld [vmem:[#allocation7 + $0x7a0] ss:$16 sps:$4 sm:$0xff]  }
 0x1da   :  { %v3969_v7 = vld [vmem:[#allocation10] sm:$0xff]  }
 0x1db   :  { %2380 = vmatmul.mubr.bf16.vlgmr.msra.gmra.mrb[8].mxu0 %v703_v15  ;;  %2544 = vmatmul.mubr.bf16.vlgmr.msra.gmra.mrb[8].mxu1 %v703_v15  ;;  %v194_v15 = vrot.slane %v4271_v9, %v193_v4  ;;  %v3937_v9 = vld [vmem:[#allocation8 + $0x40] sm:$0xff]  }
 0x1dc   :  { %2389 = vmatpush1.bf16.msra.mxu0 %v3841_v16  ;;  %2553 = vmatpush1.bf16.msra.mxu1 %v3844_v17  ;;  %v3927_v16 = vld [vmem:[#allocation7 + $0x7c4] ss:$16 sps:$4 sm:$0xff]   ;;  %v3930_v17 = vld [vmem:[#allocation7 + $0x7cc] ss:$16 sps:$4 sm:$0xff]  }
 0x1dd   :  { %2390 = vmatprep.subr.bf16.mxu0 %v3849_v18  ;;  %2554 = vmatprep.subr.bf16.mxu1 %v3852_v19  ;;  %v3925_v18 = vld [vmem:[#allocation7 + $0x7c0] ss:$16 sps:$4 sm:$0xff]   ;;  %v3928_v19 = vld [vmem:[#allocation7 + $0x7c8] ss:$16 sps:$4 sm:$0xff]  }
 0x1de   :  { %2420 = vmatprep.mubr.bf16.mxu0 %v706_v13  ;;  %2584 = vmatprep.mubr.bf16.mxu1 %v706_v13  ;;  %v685_v13 = vadd.f32 %v4290_v6, %v194_v15  ;;  %v3941_v6 = vld [vmem:[#allocation8 + $0x48] sm:$0xff]  }
 0x1e0   :  { %2391 = vmatpush1.bf16.msra.mxu0 %v3847_v20  ;;  %2555 = vmatpush1.bf16.msra.mxu1 %v3850_v21  ;;  %v3933_v20 = vld [vmem:[#allocation7 + $0x7e4] ss:$16 sps:$4 sm:$0xff]   ;;  %v3936_v21 = vld [vmem:[#allocation7 + $0x7ec] ss:$16 sps:$4 sm:$0xff]  }
 0x1e1   :  { %2392 = vmatprep.subr.bf16.mxu0 %v3855_v22  ;;  %2556 = vmatprep.subr.bf16.mxu1 %v3858_v23  ;;  %v3931_v22 = vld [vmem:[#allocation7 + $0x7e0] ss:$16 sps:$4 sm:$0xff]   ;;  %v3934_v23 = vld [vmem:[#allocation7 + $0x7e8] ss:$16 sps:$4 sm:$0xff]  }
 0x1e4   :  { %2393 = vmatpush1.bf16.msra.mxu0 %v3853_v2  ;;  %2557 = vmatpush1.bf16.msra.mxu1 %v3856_v24  ;;  %v697_v2 = vmax.f32 %v685_v13, 0.0  ;;  %v3938_v24 = vld [vmem:[#allocation8 + $0xc0] sm:$0xff]  }
 0x1e5   :  { %2394 = vmatprep.subr.bf16.mxu0 %v3861_v26  ;;  %2558 = vmatprep.subr.bf16.mxu1 %v3864_v27  ;;  %v3939_v26 = vld [vmem:[#allocation8] sm:$0xff]  }
 0x1e6   :  { %v3940_v27 = vld [vmem:[#allocation8 + $0x80] sm:$0xff]  }
 0x1e8   :  { %2395 = vmatpush1.bf16.msra.mxu0 %v3859_v28  ;;  %2559 = vmatpush1.bf16.msra.mxu1 %v3862_v30  ;;  %v705_v28 = vpack.c.bf16 %v697_v2, %v697_v2  ;;  %v3942_v30 = vld [vmem:[#allocation8 + $0xc8] sm:$0xff]   ;;  %v3973_v2 = vld [vmem:[#allocation10 + $0x20] sm:$0xff]  }
 0x1e9   :  { %2396 = vmatprep.subr.bf16.mxu0 %v3867_v31  ;;  %2560 = vmatprep.subr.bf16.mxu1 %v3870_v32  ;;  %v3943_v31 = vld [vmem:[#allocation8 + $0x8] sm:$0xff]  }
 0x1ea   :  { %v3944_v32 = vld [vmem:[#allocation8 + $0x88] sm:$0xff]  }
 0x1ec   :  { %2397 = vmatpush1.bf16.msra.mxu0 %v3865_v33  ;;  %2561 = vmatpush1.bf16.msra.mxu1 %v3868_v34  ;;  %v3945_v33 = vld [vmem:[#allocation8 + $0x50] sm:$0xff]  }
 0x1ed   :  { %2398 = vmatprep.subr.bf16.mxu0 %v3873_v35  ;;  %2562 = vmatprep.subr.bf16.mxu1 %v3876_v36  ;;  %v3946_v34 = vld [vmem:[#allocation8 + $0xd0] sm:$0xff]  }
 0x1ee   :  { %v3947_v35 = vld [vmem:[#allocation8 + $0x10] sm:$0xff]  }
 0x1ef   :  { %v3948_v36 = vld [vmem:[#allocation8 + $0x90] sm:$0xff]  }
 0x1f0   :  { %2399 = vmatpush1.bf16.msra.mxu0 %v3871_v37  ;;  %2563 = vmatpush1.bf16.msra.mxu1 %v3874_v38  ;;  %v3949_v37 = vld [vmem:[#allocation8 + $0x58] sm:$0xff]  }
 0x1f1   :  { %2400 = vmatprep.subr.bf16.mxu0 %v3879_v39  ;;  %2564 = vmatprep.subr.bf16.mxu1 %v3882_v40  ;;  %v3950_v38 = vld [vmem:[#allocation8 + $0xd8] sm:$0xff]  }
 0x1f2   :  { %v3951_v39 = vld [vmem:[#allocation8 + $0x18] sm:$0xff]  }
 0x1f3   :  { %v3952_v40 = vld [vmem:[#allocation8 + $0x98] sm:$0xff]  }
 0x1f4   :  { %2401 = vmatpush1.bf16.msra.mxu0 %v3877_v41  ;;  %2565 = vmatpush1.bf16.msra.mxu1 %v3880_v0  ;;  %v3953_v41 = vld [vmem:[#allocation8 + $0x60] sm:$0xff]  }
 0x1f5   :  { %2402 = vmatprep.subr.bf16.mxu0 %v3885_v42  ;;  %2566 = vmatprep.subr.bf16.mxu1 %v3888_v43  ;;  %v3954_v0 = vld [vmem:[#allocation8 + $0xe0] sm:$0xff]  }
 0x1f6   :  { %v3955_v42 = vld [vmem:[#allocation8 + $0x20] sm:$0xff]  }
 0x1f7   :  { %v3956_v43 = vld [vmem:[#allocation8 + $0xa0] sm:$0xff]  }
 0x1f8   :  { %2403 = vmatpush1.bf16.msra.mxu0 %v3883_v44  ;;  %2567 = vmatpush1.bf16.msra.mxu1 %v3886_v45  ;;  %v3957_v44 = vld [vmem:[#allocation8 + $0x68] sm:$0xff]  }
 0x1f9   :  { %2404 = vmatprep.subr.bf16.mxu0 %v3891_v46  ;;  %2568 = vmatprep.subr.bf16.mxu1 %v3894_v47  ;;  %v3958_v45 = vld [vmem:[#allocation8 + $0xe8] sm:$0xff]  }
 0x1fa   :  { %v3959_v46 = vld [vmem:[#allocation8 + $0x28] sm:$0xff]  }
 0x1fb   :  { %v3960_v47 = vld [vmem:[#allocation8 + $0xa8] sm:$0xff]  }
 0x1fc   :  { %2405 = vmatpush1.bf16.msra.mxu0 %v3889_v48  ;;  %2569 = vmatpush1.bf16.msra.mxu1 %v3892_v49  ;;  %v3961_v48 = vld [vmem:[#allocation8 + $0x70] sm:$0xff]  }
 0x1fd   :  { %2406 = vmatprep.subr.bf16.mxu0 %v3897_v50  ;;  %2570 = vmatprep.subr.bf16.mxu1 %v3900_v25  ;;  %v3962_v49 = vld [vmem:[#allocation8 + $0xf0] sm:$0xff]  }
 0x1fe   :  { %v3963_v50 = vld [vmem:[#allocation8 + $0x30] sm:$0xff]  }
 0x1ff   :  { %v3964_v25 = vld [vmem:[#allocation8 + $0xb0] sm:$0xff]  }
 0x200   :  { %2407 = vmatpush1.bf16.msra.mxu0 %v3895_v51  ;;  %2571 = vmatpush1.bf16.msra.mxu1 %v3898_v52  ;;  %v3965_v51 = vld [vmem:[#allocation8 + $0x78] sm:$0xff]  }
 0x201   :  { %2408 = vmatprep.subr.bf16.mxu0 %v3903_v53  ;;  %2572 = vmatprep.subr.bf16.mxu1 %v3906_v54  ;;  %v3966_v52 = vld [vmem:[#allocation8 + $0xf8] sm:$0xff]  }
 0x202   :  { %v3967_v53 = vld [vmem:[#allocation8 + $0x38] sm:$0xff]  }
 0x203   :  { %v3968_v54 = vld [vmem:[#allocation8 + $0xb8] sm:$0xff]  }
 0x204   :  { %2409 = vmatpush1.bf16.msra.mxu0 %v3901_v55  ;;  %2573 = vmatpush1.bf16.msra.mxu1 %v3904_v56  ;;  %v4129_v55 = vmov 0.0   ;;  %v963_v56 = vld [vmem:[%s4346_s6] sm:$0xf] }
 0x205   :  { %2410 = vmatprep.subr.bf16.mxu0 %v3909_v57  ;;  %2574 = vmatprep.subr.bf16.mxu1 %v3912_v59  ;;  %v968_v57 = vrot.slane %v963_v56, %v169_v8  ;;  %v976_v59 = vrot.slane %v963_v56, %v177_v29 }
 0x208   :  { %2411 = vmatpush1.bf16.msra.mxu0 %v3907_v60  ;;  %2575 = vmatpush1.bf16.msra.mxu1 %v3910_v61  ;;  %v972_v60 = vrot.slane %v963_v56, %v173_v10  ;;  %v980_v61 = vrot.slane %v963_v56, %v181_v14 }
 0x209   :  { %2412 = vmatprep.subr.bf16.mxu0 %v3915_v62  ;;  %2576 = vmatprep.subr.bf16.mxu1 %v3918_v63 }
 0x20c   :  { %2413 = vmatpush1.bf16.msra.mxu0 %v3913_v1  ;;  %2577 = vmatpush1.bf16.msra.mxu1 %v3916_v3 }
 0x20d   :  { %2414 = vmatprep.subr.bf16.mxu0 %v3921_v5  ;;  %2578 = vmatprep.subr.bf16.mxu1 %v3924_v11 }
 0x210   :  { %2415 = vmatpush1.bf16.msra.mxu0 %v3919_v12  ;;  %2579 = vmatpush1.bf16.msra.mxu1 %v3922_v58 }
 0x211   :  { %2416 = vmatprep.subr.bf16.mxu0 %v3927_v16  ;;  %2580 = vmatprep.subr.bf16.mxu1 %v3930_v17 }
 0x214   :  { %2417 = vmatpush1.bf16.msra.mxu0 %v3925_v18  ;;  %2581 = vmatpush1.bf16.msra.mxu1 %v3928_v19 }
 0x215   :  { %2418 = vmatprep.subr.bf16.mxu0 %v3933_v20  ;;  %2582 = vmatprep.subr.bf16.mxu1 %v3936_v21  ;;  %v3970_v21 = vld [vmem:[#allocation10 + $0x8] sm:$0xff]  }
 0x218   :  { %2419 = vmatpush1.bf16.msra.mxu0 %v3931_v22  ;;  %2583 = vmatpush1.bf16.msra.mxu1 %v3934_v23  ;;  %v3971_v22 = vld [vmem:[#allocation10 + $0x10] sm:$0xff]   ;;  %v3972_v23 = vld [vmem:[#allocation10 + $0x18] sm:$0xff]  }
 0x219   :  { %3437 = vmatprep.subr.bf16.mxu0 %v3937_v9  ;;  %3459 = vmatprep.subr.bf16.mxu1 %v3938_v24  ;;  %v3974_v9 = vld [vmem:[#allocation10 + $0x28] sm:$0xff]   ;;  %v3975_v24 = vld [vmem:[#allocation10 + $0x30] sm:$0xff]  }
 0x21b   :  { %2421 = vmatmul.mubr.bf16.vlgmr.msra.gmra.mrb[8].mxu0 %v705_v28  ;;  %2585 = vmatmul.mubr.bf16.vlgmr.msra.gmra.mrb[8].mxu1 %v705_v28 }
 0x21c   :  { %3438 = vmatpush3.bf16.msra.mxu0 %v3939_v26  ;;  %3460 = vmatpush3.bf16.msra.mxu1 %v3940_v27  ;;  %v3976_v26 = vld [vmem:[#allocation10 + $0x38] sm:$0xff]  }
 0x21d   :  { %3439 = vmatprep.subr.bf16.mxu0 %v3941_v6  ;;  %3461 = vmatprep.subr.bf16.mxu1 %v3942_v30  ;;  %v3395_v6 = vld [vmem:[%s4347_s7] ss:$0 sm:$0xff]  ;;  %s4087_s7 = scalar_lea.vmem %s3065_s13, 128 }
 0x21e   :  { %p4088_p12 = scmp.ne.s32.totalorder %s3065_s13, %s4087_s7  ;;  %p4093_p0 = scmp.lt.s32.totalorder %s4087_s7, %s4087_s7 }
 0x220   :  { %3440 = vmatpush3.bf16.msra.mxu0 %v3943_v31  ;;  %3462 = vmatpush3.bf16.msra.mxu1 %v3944_v32  ;;  %p4094_p1 = por %p4093_p0, %p4092_p13 }
 0x221   :  { %3441 = vmatprep.subr.bf16.mxu0 %v3945_v33  ;;  %3463 = vmatprep.subr.bf16.mxu1 %v3946_v34 }
 0x222   :  { %p4095_p2 = pnand %p4094_p1, %p4088_p12 }
 0x224   :  { %3442 = vmatpush3.bf16.msra.mxu0 %v3947_v35  ;;  %3464 = vmatpush3.bf16.msra.mxu1 %v3948_v36 }
 0x225   :  { %3443 = vmatprep.subr.bf16.mxu0 %v3949_v37  ;;  %3465 = vmatprep.subr.bf16.mxu1 %v3950_v38 }
 0x228   :  { %3444 = vmatpush3.bf16.msra.mxu0 %v3951_v39  ;;  %3466 = vmatpush3.bf16.msra.mxu1 %v3952_v40 }
 0x229   :  { %3445 = vmatprep.subr.bf16.mxu0 %v3953_v41  ;;  %3467 = vmatprep.subr.bf16.mxu1 %v3954_v0  ;;  %v3428_v0 = vld [vmem:[%s4348_s8] ss:$0 sm:$0xff] }
 0x22c   :  { %3446 = vmatpush3.bf16.msra.mxu0 %v3955_v42  ;;  %3468 = vmatpush3.bf16.msra.mxu1 %v3956_v43 }
 0x22d   :  { %3447 = vmatprep.subr.bf16.mxu0 %v3957_v44  ;;  %3469 = vmatprep.subr.bf16.mxu1 %v3958_v45 }
 0x230   :  { %3448 = vmatpush3.bf16.msra.mxu0 %v3959_v46  ;;  %3470 = vmatpush3.bf16.msra.mxu1 %v3960_v47 }
 0x231   :  { %3449 = vmatprep.subr.bf16.mxu0 %v3961_v48  ;;  %3471 = vmatprep.subr.bf16.mxu1 %v3962_v49 }
 0x234   :  { %3450 = vmatpush3.bf16.msra.mxu0 %v3963_v50  ;;  %3472 = vmatpush3.bf16.msra.mxu1 %v3964_v25 }
 0x235   :  { %3451 = vmatprep.subr.bf16.mxu0 %v3965_v51  ;;  %3473 = vmatprep.subr.bf16.mxu1 %v3966_v52 }
 0x238   :  { %3452 = vmatpush3.bf16.msra.mxu0 %v3967_v53  ;;  %3474 = vmatpush3.bf16.msra.mxu1 %v3968_v54 }
 0x239   :  { %3490 = vmatprep.subr.bf16.mxu0 %v4129_v55 }
 0x2ee   :  { %v2422_v62 = vpop.f32.mrb[8].mxu0  ;;  %v2586_v63 = vpop.f32.mrb[8].mxu1 }
 0x2ef   :  { %v3510_v1 = vadd.f32 %v2422_v62, %v968_v57  ;;  %v3512_v3 = vadd.f32 %v2586_v63, %v976_v59  ;;  %v2424_v4 = vpop.f32.mrb[9].mxu0  ;;  %v2588_v5 = vpop.f32.mrb[9].mxu1 }
 0x2f0   :  { %v3511_v11 = vadd.f32 %v2424_v4, %v972_v60  ;;  %v3513_v12 = vadd.f32 %v2588_v5, %v980_v61  ;;  %v2426_v58 = vpop.f32.mrb[10].mxu0  ;;  %v2590_v15 = vpop.f32.mrb[10].mxu1 }
 0x2f1   :  { %v2593_v8 = vmax.f32 %v3510_v1, 0.0  ;;  %v2595_v16 = vmax.f32 %v3512_v3, 0.0  ;;  %v2427_v17 = vpop.f32.mrb[11].mxu0  ;;  %v2591_v29 = vpop.f32.mrb[11].mxu1 }
 0x2f2   :  { %v2594_v18 = vmax.f32 %v3511_v11, 0.0  ;;  %v2596_v19 = vmax.f32 %v3513_v12, 0.0 }
 0x2f3   :  { %v2597_v14 = vpack.c.bf16 %v2593_v8, %v2593_v8  ;;  %v2599_v20 = vpack.c.bf16 %v2595_v16, %v2595_v16 }
 0x2f4   :  { %v2598_v10 = vpack.c.bf16 %v2594_v18, %v2594_v18  ;;  %v2600_v13 = vpack.c.bf16 %v2596_v19, %v2596_v19 }
 0x2f6   :  { %2896 = vmatprep.mubr.bf16.mxu0 %v2598_v10  ;;  %2936 = vmatprep.mubr.bf16.mxu1 %v2600_v13 }
 0x2f7   :  { %2897 = vmatmul.mubr.bf16.vlgmr.msra.gmra.mrb[12].mxu0 %v2597_v14  ;;  %2937 = vmatmul.mubr.bf16.vlgmr.msra.gmra.mrb[12].mxu1 %v2599_v20 }
 0x2f8   :  { %3491 = vmatpush3.bf16.msra.mxu0 %v3969_v7  ;;  %3506 = vmatprep.mubr.msk.bf16.mxu0 %vm4130_vm0, %v4129_v55 }
 0x2f9   :  { %3492 = vmatprep.subr.bf16.mxu0 %v4129_v55 }
 0x2fc   :  { %3493 = vmatpush3.bf16.msra.mxu0 %v3970_v21 }
 0x2fd   :  { %3494 = vmatprep.subr.bf16.mxu0 %v4129_v55 }
 0x300   :  { %3495 = vmatpush3.bf16.msra.mxu0 %v3971_v22 }
 0x301   :  { %3496 = vmatprep.subr.bf16.mxu0 %v4129_v55 }
 0x304   :  { %3497 = vmatpush3.bf16.msra.mxu0 %v3972_v23 }
 0x305   :  { %3498 = vmatprep.subr.bf16.mxu0 %v4129_v55 }
 0x308   :  { %3499 = vmatpush3.bf16.msra.mxu0 %v3973_v2 }
 0x309   :  { %3500 = vmatprep.subr.bf16.mxu0 %v4129_v55 }
 0x30c   :  { %3501 = vmatpush3.bf16.msra.mxu0 %v3974_v9 }
 0x30d   :  { %3502 = vmatprep.subr.bf16.mxu0 %v4129_v55 }
 0x310   :  { %3503 = vmatpush3.bf16.msra.mxu0 %v3975_v24 }
 0x311   :  { %3504 = vmatprep.subr.bf16.mxu0 %v4129_v55 }
 0x314   :  { %3505 = vmatpush3.bf16.msra.mxu0 %v3976_v26 }
 0x3ca   :  { %v3453_v27 = vpop.f32.mrb[12].mxu0  ;;  %v3475_v28 = vpop.f32.mrb[12].mxu1 }
 0x3cb   :  { %v3454_v30 = vpop.f32.mrb[13].mxu0  ;;  %v3476_v31 = vpop.f32.mrb[13].mxu1 }
 0x3cc   :  { %v3455_v32 = vadd.f32 %v3454_v30, %v3453_v27  ;;  %v3477_v33 = vadd.f32 %v3476_v31, %v3475_v28  ;;  %v3456_v34 = vpop.f32.mrb[14].mxu0  ;;  %v3478_v35 = vpop.f32.mrb[14].mxu1 }
 0x3cd   :  { %v3457_v36 = vpop.f32.mrb[15].mxu0  ;;  %v3479_v37 = vpop.f32.mrb[15].mxu1 }
 0x3ce   :  { %v2899_v38 = vadd.f32 %v3455_v32, %v3395_v6 }
 0x3d0   :  { %v2939_v39 = vadd.f32 %v3477_v33, %v2899_v38 }
 0x3d2   :  { %v2944_v40 = vmax.f32 %v2939_v39, 0.0 }
 0x3d4   :  { %v2945_v41 = vpack.c.bf16 %v2944_v40, %v2944_v40 }
 0x3d6   :  { %3507 = vmatmul.mubr.bf16.vlgmr.msra.gmra.mrb[16].mxu0 %v2945_v41 }
 0x4a9   :  { %v3051_v42 = vpop.f32.mrb[16].mxu0 }
 0x4aa   :  { %v3052_v43 = vadd.f32 %v3428_v0, %v3051_v42  ;;  %v3508_v44 = vpop.f32.mrb[17].mxu0 }
 0x4ab   :  { %v3054_v45 = vpop.f32.mrb[18].mxu0 }
 0x4ac   :  { %3057 = vst [vmem:[#allocation11] sm:$0xff] %v3052_v43  ;;  %v3509_v46 = vpop.f32.mrb[19].mxu0 }
 0x4ad   :  { %4098 = shalt.err (!%p4095_p2)
}
 0x4ae   :  { %s4099_s8 = scalar_lea.hbm %s4349_s9, 128 }
 0x4af   :  { %p4100_p3 = scmp.ne.s32.totalorder %s4349_s9, %s4099_s8  ;;  %p4103_p4 = scmp.lt.u32.totalorder %s4099_s8, %s4349_s9 }
 0x4b1   :  { %p4105_p5 = pnand %p4103_p4, %p4100_p3 }
 0x4b3   :  { %4108 = shalt.err (!%p4105_p5)
}
 0x4b4   :  { %3067 = dma.vmem_to_hbm [thread:$0]  %s3065_s13, 128, %s4349_s9, [#allocation4]  }
 0x4b5   :  { %4115 = dma.done.wait [#allocation4], 128  }
 0x4b6   :  { %4116 = vsyncadd [#allocation4], 4294967168 }
 0x4b7   :  { %3071 = vsyncpa [#allocation3], 1 }
 0x4b8   :  { %3072 = vsyncpa [#allocation6], 1 }
 0x4b9   :  { %3073 = vsyncpa [#allocation9], 1 }
 0x4ba   :  { %3074 = vsyncpa [#allocation4], 1 }

</bundles_post_ra>
